<compile_context>
chip_gen: v7x
topology: tpu7x:2x2x1
jax: 0.10.0
libtpu: 0.0.40
codegen_flags: <defaults>
</compile_context>

<pallas_src>
import jax
import jax.numpy as jnp
import numpy as np
from jax.experimental import pallas as pl
from jax.experimental.pallas import tpu as pltpu


# ---------------------------------------------------------------------------
# The single fused Pallas kernel (one batch block of TB samples per grid step)
# ---------------------------------------------------------------------------
def lenet5_kernel(x_ref, mtop_ref, mbot_ref, g1_ref, b1_ref, g2_ref, b2_ref,
                  wt_ref, bfc_ref, o_ref):
    """Whole LeNet5 forward for one batch block, fully VMEM-resident.

    Stacked-row layout (built by the wrapper): within a block, stacked row
    p*TB + n holds image-row pair (2p, 2p+1) of local sample n in its 56
    lanes (dr*28 + col).  Hence:
      * conv1 row neighbours are sublane rolls by +-TB (masked at p=0 / p=13
        for the zero padding),
      * avg-pool row pairs live in the SAME stacked row -> pooling is folded
        entirely into the G2cat weight columns,
      * conv2 output row i of every sample is the contiguous row group
        [i*TB, (i+1)*TB), so fc1 needs only aligned static slices.

    x_ref   : (14*TB, 56)    input block, row-pair-in-lanes layout (f32)
    mtop_ref: (14*TB, 1)     0 on the first row-pair of each sample, else 1
    mbot_ref: (14*TB, 1)     0 on the last  row-pair of each sample, else 1
    g1_ref  : (168, 336)     conv1 folded weights (bf16), out lane = dr*168+j*6+co
    b1_ref  : (1, 336)       conv1 bias replicated (f32)
    g2_ref  : (1008, 192)    pool1+conv2 folded weights (bf16), out lane = j*16+co
    b2_ref  : (1, 192)       conv2 bias replicated (f32)
    wt_ref  : (12, 192, 128) pool2+flatten+fc1 weight slabs (bf16), classes padded to 128
    bfc_ref : (1, 128)       fc1 bias, pad lanes = -1e30 (f32)
    o_ref   : (TB, 128)      log_softmax output block (lane-dense store)
    """
    tb = o_ref.shape[0]

    x = x_ref[...]                                                   # (14*TB, 56) f32
    # conv1 row window: previous / next row pair via sublane roll + boundary mask
    prev = jnp.roll(x, tb, axis=0) * mtop_ref[...]
    nxt = jnp.roll(x, -tb, axis=0) * mbot_ref[...]
    xcat = jnp.concatenate([prev, x, nxt], axis=1).astype(jnp.bfloat16)   # (14*TB, 168)

    # conv1 (3x3, pad=1, 1->6) + ReLU, one matmul (kh folded into K).
    a1 = jnp.dot(xcat, g1_ref[...], preferred_element_type=jnp.float32)   # (14*TB, 336)
    a1 = jnp.maximum(a1 + b1_ref[...], 0.0).astype(jnp.bfloat16)

    # avgpool(2,2) + conv2 (3x3, 6->16) + ReLU, one matmul.
    # Column pooling, row pooling (both image rows of a pair are in lanes) and
    # the kh window are folded into G2cat; the conv2 row window i -> i+kh is a
    # sublane roll by kh*TB.  Rows with p in {12, 13} are junk and never read.
    m2 = jnp.concatenate(
        [a1, jnp.roll(a1, -tb, axis=0), jnp.roll(a1, -2 * tb, axis=0)], axis=1)  # (14*TB, 1008)
    a2 = jnp.dot(m2, g2_ref[...], preferred_element_type=jnp.float32)            # (14*TB, 192)
    a2 = jnp.maximum(a2 + b2_ref[...], 0.0).astype(jnp.bfloat16)

    # avgpool(2,2) + torch.flatten(x,1) + fc1, folded into wt_ref.
    # Conv2 output row i of all TB samples is the aligned row group i*TB..(i+1)*TB-1,
    # so each term is a dense (TB,192)@(192,128) matmul; no redundant rows.
    logits = bfc_ref[...]                                            # (1, 128) -> (TB, 128)
    for i in range(12):
        logits = logits + jnp.dot(a2[i * tb:(i + 1) * tb, :], wt_ref[i],
                                  preferred_element_type=jnp.float32)

    # log_softmax(dim=1), numerically stabilized; pad lanes hold -1e30 -> exp()=0.
    mx = jnp.max(logits, axis=-1, keepdims=True)
    sh = logits - mx
    lse = jnp.log(jnp.sum(jnp.exp(sh), axis=-1, keepdims=True))
    o_ref[...] = sh - lse


def lenet5_forward(x, op_params, block_batch=8):
    """x: (N, 1, 28, 28) -> (N, 10) log-probs.  block_batch samples per grid step."""
    g1, b1r, g2, b2r, wt, bfcp = op_params
    n = x.shape[0]
    tb = block_batch
    nb = -(-n // tb)
    n_pad = nb * tb

    x = x.reshape(n, 28, 28).astype(jnp.float32)
    if n_pad != n:
        x = jnp.concatenate([x, jnp.zeros((n_pad - n, 28, 28), jnp.float32)], axis=0)
    # Wrapper-side layout plumbing (outside the kernel): per batch block, stack
    # rows as (row-pair p, local sample n) with the two rows of a pair in lanes.
    x_stack = (x.reshape(nb, tb, 14, 2, 28)
               .transpose(0, 2, 1, 3, 4)
               .reshape(nb * 14 * tb, 56))

    # Boundary masks for the conv1 row-pair shifts (zero padding / block edges).
    p_idx = np.arange(14 * tb) // tb
    mtop = jnp.asarray((p_idx != 0).astype(np.float32)[:, None])     # (14*TB, 1)
    mbot = jnp.asarray((p_idx != 13).astype(np.float32)[:, None])    # (14*TB, 1)

    rows_blk = 14 * tb
    out = pl.pallas_call(
        lenet5_kernel,
        out_shape=jax.ShapeDtypeStruct((n_pad, 128), jnp.float32),
        grid=(nb,),
        in_specs=[
            pl.BlockSpec((rows_blk, 56), lambda b: (b, 0)),          # input block
            pl.BlockSpec((rows_blk, 1), lambda b: (0, 0)),           # mask top
            pl.BlockSpec((rows_blk, 1), lambda b: (0, 0)),           # mask bottom
            pl.BlockSpec((168, 336), lambda b: (0, 0)),              # g1cat (bf16)
            pl.BlockSpec((1, 336), lambda b: (0, 0)),                # b1 replicated
            pl.BlockSpec((1008, 192), lambda b: (0, 0)),             # g2cat (bf16)
            pl.BlockSpec((1, 192), lambda b: (0, 0)),                # b2 replicated
            pl.BlockSpec((12, 192, 128), lambda b: (0, 0, 0)),       # fc1 slabs (bf16)
            pl.BlockSpec((1, 128), lambda b: (0, 0)),                # fc1 bias (padded)
        ],
        out_specs=pl.BlockSpec((tb, 128), lambda b: (b, 0)),
        compiler_params=pltpu.CompilerParams(
            dimension_semantics=("parallel",)),                      # v7x: both TCs
    )(x_stack, mtop, mbot, g1, b1r, g2, b2r, wt, bfcp)
    return out[:n, :10]


# ---------------------------------------------------------------------------
# Parameters: PyTorch-layout init + one-time folding into operator matrices
# ---------------------------------------------------------------------------
def init_params(key):
    # PyTorch-style uniform(-1/sqrt(fan_in), 1/sqrt(fan_in)); deterministic.
    ks = jax.random.split(key, 6)

    def uni(k, shape, fan_in):
        bound = 1.0 / np.sqrt(fan_in)
        return jax.random.uniform(k, shape, jnp.float32, -bound, bound)

    w1 = uni(ks[0], (6, 1, 3, 3), 1 * 9)    # conv1 weight (Cout, Cin, kh, kw)
    b1 = uni(ks[1], (6,), 1 * 9)
    w2 = uni(ks[2], (16, 6, 3, 3), 6 * 9)   # conv2 weight
    b2 = uni(ks[3], (16,), 6 * 9)
    wfc = uni(ks[4], (10, 576), 576)        # fc1 weight (out, in)
    bfc = uni(ks[5], (10,), 576)
    return (w1, b1, w2, b2, wfc, bfc)


def prepare_operator_params(params):
    """Fold conv / avg-pool / flatten structure into dense operator matrices.

    Done once at init (numpy) -> zero cost per forward.  Exact
    re-parameterisation of the PyTorch layers for the row-pair-in-lanes
    layout, including the conv1 zero padding, both avg-pool scales (0.25)
    and the torch.flatten(x, 1) NCHW feature ordering.  Weight operators are
    stored bf16 (MXU-native on v6e/v7x); biases stay f32.
    """
    w1, b1, w2, b2, wfc, bfc = [np.asarray(p, dtype=np.float32) for p in params]

    # conv1: A1 = relu(Xcat @ G1cat + b1rep)
    #   Xcat lane = blk*56 + dr'*28 + c   (blk: prev/cur/next row pair)
    #   A1   lane = dr*168 + j*6 + co     == relu(conv1)[co, 2p+dr, j]
    g1cat = np.zeros((168, 336), np.float32)
    for dr in range(2):
        for kh in range(3):
            t = dr + kh - 1                   # absolute row offset from 2p
            blk = t // 2 + 1                  # which row pair (floor div handles -1)
            drp = t % 2                       # parity inside that pair
            for j in range(28):
                for c in range(28):
                    kw = c - j + 1            # W zero padding via band bounds
                    if 0 <= kw < 3:
                        g1cat[blk * 56 + drp * 28 + c,
                              dr * 168 + j * 6: dr * 168 + (j + 1) * 6] = w1[:, 0, kh, kw]
    b1rep = np.tile(b1, 56)[None, :]          # (1, 336): lane dr*168+j*6+co -> b1[co]

    # pool1 (avg 2x2) + conv2 (valid 3x3): A2 = relu(M2cat @ G2cat + b2rep)
    #   M2cat lane = kh*336 + dr*168 + jc*6 + ci ;  A2 lane = j*16 + co
    g2cat = np.zeros((1008, 192), np.float32)
    for kh in range(3):
        for dr in range(2):
            for jc in range(28):
                for j in range(12):
                    kw = jc // 2 - j
                    if 0 <= kw < 3:
                        for ci in range(6):
                            g2cat[kh * 336 + dr * 168 + jc * 6 + ci,
                                  j * 16:(j + 1) * 16] = 0.25 * w2[:, ci, kh, kw]
    b2rep = np.tile(b2, 12)[None, :]          # (1, 192): lane j*16+co -> b2[co]

    # pool2 (avg 2x2) + torch.flatten(x,1) + fc1: logits = bfc + sum_i A2_row_i @ wt[i]
    # Classes padded 10 -> 128 (zero weight columns) for a lane-dense output store.
    wt = np.zeros((12, 192, 128), np.float32)
    for i in range(12):
        for j in range(12):
            for co in range(16):
                f = co * 36 + (i // 2) * 6 + (j // 2)    # PyTorch NCHW flatten index
                wt[i, j * 16 + co, :10] = 0.25 * wfc[:, f]
    bfc_pad = np.full((1, 128), -1e30, np.float32)       # pad lanes -> exp() == 0
    bfc_pad[0, :10] = bfc

    return (jnp.asarray(g1cat, jnp.bfloat16), jnp.asarray(b1rep, jnp.float32),
            jnp.asarray(g2cat, jnp.bfloat16), jnp.asarray(b2rep, jnp.float32),
            jnp.asarray(wt, jnp.bfloat16), jnp.asarray(bfc_pad, jnp.float32))


# ---------------------------------------------------------------------------
# Plain-JAX reference of the exact PyTorch forward (for correctness check)
# ---------------------------------------------------------------------------
def lenet5_reference(x, params):
    w1, b1, w2, b2, wfc, bfc = params
    dn = ("NCHW", "OIHW", "NCHW")
    y = jax.lax.conv_general_dilated(x, w1, (1, 1), ((1, 1), (1, 1)), dimension_numbers=dn)
    y = jnp.maximum(y + b1[None, :, None, None], 0.0)
    y = jax.lax.reduce_window(y, 0.0, jax.lax.add, (1, 1, 2, 2), (1, 1, 2, 2), "VALID") * 0.25
    y = jax.lax.conv_general_dilated(y, w2, (1, 1), "VALID", dimension_numbers=dn)
    y = jnp.maximum(y + b2[None, :, None, None], 0.0)
    y = jax.lax.reduce_window(y, 0.0, jax.lax.add, (1, 1, 2, 2), (1, 1, 2, 2), "VALID") * 0.25
    y = y.reshape(y.shape[0], -1)                # torch.flatten(x, 1) (NCHW order)
    logits = y @ wfc.T + bfc
    return jax.nn.log_softmax(logits, axis=-1)


if __name__ == "__main__":
    key = jax.random.PRNGKey(0)
    kx, kp = jax.random.split(key)
    # fc1 expects 576 = 16*6*6 features, which pins the input to (N, 1, 28, 28).
    x = jax.random.normal(kx, (2, 1, 28, 28), jnp.float32)
    params = init_params(kp)
    op_params = prepare_operator_params(params)      # one-time weight folding

    fwd = jax.jit(lenet5_forward)
    out = jax.block_until_ready(fwd(x, op_params))

    assert out.shape == (2, 10), out.shape

    # Match the exact PyTorch forward.  Weights/activations are deliberately
    # bf16 at the MXU (the module is the "quantized" LeNet; stubs are identity
    # in float mode), accumulation is f32 -> tolerance covers bf16 rounding;
    # any structural/indexing error would be orders of magnitude larger.
    ref = np.asarray(lenet5_reference(x, params))
    err = float(np.max(np.abs(np.asarray(out) - ref)))
    assert np.allclose(np.asarray(out), ref, atol=1e-1, rtol=1e-1), err

    # log_softmax rows must exponentiate-sum to 1 (computed in f32 in-kernel).
    row_sums = np.exp(np.asarray(out)).sum(axis=1)
    assert np.allclose(row_sums, 1.0, atol=1e-3), row_sums

    print("KERNEL_OK")
</pallas_src>

<mosaic_0001>
module attributes {stable_mosaic.version = 11 : i64} {
  func.func @lenet5_kernel(%arg0: i32, %arg1: memref<112x56xf32, #tpu.memory_space<vmem>>, %arg2: memref<112x1xf32, #tpu.memory_space<vmem>>, %arg3: memref<112x1xf32, #tpu.memory_space<vmem>>, %arg4: memref<168x336xbf16, #tpu.memory_space<vmem>>, %arg5: memref<1x336xf32, #tpu.memory_space<vmem>>, %arg6: memref<1008x192xbf16, #tpu.memory_space<vmem>>, %arg7: memref<1x192xf32, #tpu.memory_space<vmem>>, %arg8: memref<12x192x128xbf16, #tpu.memory_space<vmem>>, %arg9: memref<1x128xf32, #tpu.memory_space<vmem>>, %arg10: memref<8x128xf32, #tpu.memory_space<vmem>>) attributes {dimension_semantics = [#tpu.dimension_semantics<parallel>], iteration_bounds = array<i64: 1>, scalar_prefetch = 0 : i64, scratch_operands = 0 : i64, tpu.core_type = #tpu.core_type<tc>, window_params = [{transform_indices = @transform_0, window_bounds = array<i64: 112, 56>}, {pipeline_mode = #tpu.pipeline_mode<synchronous>, transform_indices = @transform_1, window_bounds = array<i64: 112, 1>}, {pipeline_mode = #tpu.pipeline_mode<synchronous>, transform_indices = @transform_2, window_bounds = array<i64: 112, 1>}, {pipeline_mode = #tpu.pipeline_mode<synchronous>, transform_indices = @transform_3, window_bounds = array<i64: 168, 336>}, {pipeline_mode = #tpu.pipeline_mode<synchronous>, transform_indices = @transform_4, window_bounds = array<i64: 1, 336>}, {pipeline_mode = #tpu.pipeline_mode<synchronous>, transform_indices = @transform_5, window_bounds = array<i64: 1008, 192>}, {pipeline_mode = #tpu.pipeline_mode<synchronous>, transform_indices = @transform_6, window_bounds = array<i64: 1, 192>}, {pipeline_mode = #tpu.pipeline_mode<synchronous>, transform_indices = @transform_7, window_bounds = array<i64: 12, 192, 128>}, {pipeline_mode = #tpu.pipeline_mode<synchronous>, transform_indices = @transform_8, window_bounds = array<i64: 1, 128>}, {transform_indices = @transform_9, window_bounds = array<i64: 8, 128>}]} {
    %c0 = arith.constant 0 : index
    %c0_0 = arith.constant 0 : index
    %0 = vector.load %arg1[%c0, %c0_0] : memref<112x56xf32, #tpu.memory_space<vmem>>, vector<112x56xf32>
    %1 = vector.extract_strided_slice %0 {offsets = [104, 0], sizes = [8, 56], strides = [1, 1]} : vector<112x56xf32> to vector<8x56xf32>
    %2 = vector.extract_strided_slice %0 {offsets = [0, 0], sizes = [104, 56], strides = [1, 1]} : vector<112x56xf32> to vector<104x56xf32>
    %3 = tpu.concatenate %1, %2 in 0 : vector<8x56xf32>, vector<104x56xf32> -> vector<112x56xf32>
    %c0_1 = arith.constant 0 : index
    %c0_2 = arith.constant 0 : index
    %4 = vector.load %arg2[%c0_1, %c0_2] : memref<112x1xf32, #tpu.memory_space<vmem>>, vector<112x1xf32>
    %5 = vector.broadcast %4 : vector<112x1xf32> to vector<112x56xf32>
    %6 = arith.mulf %3, %5 : vector<112x56xf32>
    %7 = vector.extract_strided_slice %0 {offsets = [8, 0], sizes = [104, 56], strides = [1, 1]} : vector<112x56xf32> to vector<104x56xf32>
    %8 = vector.extract_strided_slice %0 {offsets = [0, 0], sizes = [8, 56], strides = [1, 1]} : vector<112x56xf32> to vector<8x56xf32>
    %9 = tpu.concatenate %7, %8 in 0 : vector<104x56xf32>, vector<8x56xf32> -> vector<112x56xf32>
    %c0_3 = arith.constant 0 : index
    %c0_4 = arith.constant 0 : index
    %10 = vector.load %arg3[%c0_3, %c0_4] : memref<112x1xf32, #tpu.memory_space<vmem>>, vector<112x1xf32>
    %11 = vector.broadcast %10 : vector<112x1xf32> to vector<112x56xf32>
    %12 = arith.mulf %9, %11 : vector<112x56xf32>
    %13 = tpu.concatenate %6, %0, %12 in 1 : vector<112x56xf32>, vector<112x56xf32>, vector<112x56xf32> -> vector<112x168xf32>
    %14 = arith.truncf %13 : vector<112x168xf32> to vector<112x168xbf16>
    %c0_5 = arith.constant 0 : index
    %c0_6 = arith.constant 0 : index
    %15 = vector.load %arg4[%c0_5, %c0_6] : memref<168x336xbf16, #tpu.memory_space<vmem>>, vector<168x336xbf16>
    %cst = arith.constant dense<0.000000e+00> : vector<112x336xf32>
    %16 = tpu.matmul %14, %15, %cst {dimension_numbers = #tpu.dot_dimension_numbers<[1], [0], [0], [1], [0, 0, 1, 1], [], []>} : vector<112x168xbf16>, vector<168x336xbf16>, vector<112x336xf32> -> vector<112x336xf32>
    %c0_7 = arith.constant 0 : index
    %c0_8 = arith.constant 0 : index
    %17 = vector.load %arg5[%c0_7, %c0_8] : memref<1x336xf32, #tpu.memory_space<vmem>>, vector<1x336xf32>
    %18 = vector.broadcast %17 : vector<1x336xf32> to vector<112x336xf32>
    %19 = arith.addf %16, %18 : vector<112x336xf32>
    %cst_9 = arith.constant 0.000000e+00 : f32
    %20 = vector.broadcast %cst_9 : f32 to vector<112x336xf32>
    %21 = arith.maximumf %19, %20 : vector<112x336xf32>
    %22 = arith.truncf %21 : vector<112x336xf32> to vector<112x336xbf16>
    %23 = vector.extract_strided_slice %22 {offsets = [8, 0], sizes = [104, 336], strides = [1, 1]} : vector<112x336xbf16> to vector<104x336xbf16>
    %24 = vector.extract_strided_slice %22 {offsets = [0, 0], sizes = [8, 336], strides = [1, 1]} : vector<112x336xbf16> to vector<8x336xbf16>
    %25 = tpu.concatenate %23, %24 in 0 : vector<104x336xbf16>, vector<8x336xbf16> -> vector<112x336xbf16>
    %26 = vector.extract_strided_slice %22 {offsets = [16, 0], sizes = [96, 336], strides = [1, 1]} : vector<112x336xbf16> to vector<96x336xbf16>
    %27 = vector.extract_strided_slice %22 {offsets = [0, 0], sizes = [16, 336], strides = [1, 1]} : vector<112x336xbf16> to vector<16x336xbf16>
    %28 = tpu.concatenate %26, %27 in 0 : vector<96x336xbf16>, vector<16x336xbf16> -> vector<112x336xbf16>
    %29 = tpu.concatenate %22, %25, %28 in 1 : vector<112x336xbf16>, vector<112x336xbf16>, vector<112x336xbf16> -> vector<112x1008xbf16>
    %c0_10 = arith.constant 0 : index
    %c0_11 = arith.constant 0 : index
    %30 = vector.load %arg6[%c0_10, %c0_11] : memref<1008x192xbf16, #tpu.memory_space<vmem>>, vector<1008x192xbf16>
    %cst_12 = arith.constant dense<0.000000e+00> : vector<112x192xf32>
    %31 = tpu.matmul %29, %30, %cst_12 {dimension_numbers = #tpu.dot_dimension_numbers<[1], [0], [0], [1], [0, 0, 1, 1], [], []>} : vector<112x1008xbf16>, vector<1008x192xbf16>, vector<112x192xf32> -> vector<112x192xf32>
    %c0_13 = arith.constant 0 : index
    %c0_14 = arith.constant 0 : index
    %32 = vector.load %arg7[%c0_13, %c0_14] : memref<1x192xf32, #tpu.memory_space<vmem>>, vector<1x192xf32>
    %33 = vector.broadcast %32 : vector<1x192xf32> to vector<112x192xf32>
    %34 = arith.addf %31, %33 : vector<112x192xf32>
    %cst_15 = arith.constant 0.000000e+00 : f32
    %35 = vector.broadcast %cst_15 : f32 to vector<112x192xf32>
    %36 = arith.maximumf %34, %35 : vector<112x192xf32>
    %37 = arith.truncf %36 : vector<112x192xf32> to vector<112x192xbf16>
    %c0_16 = arith.constant 0 : index
    %c0_17 = arith.constant 0 : index
    %38 = vector.load %arg9[%c0_16, %c0_17] : memref<1x128xf32, #tpu.memory_space<vmem>>, vector<1x128xf32>
    %39 = vector.extract_strided_slice %37 {offsets = [0, 0], sizes = [8, 192], strides = [1, 1]} : vector<112x192xbf16> to vector<8x192xbf16>
    %c0_18 = arith.constant 0 : index
    %c0_19 = arith.constant 0 : index
    %c0_20 = arith.constant 0 : index
    %40 = vector.load %arg8[%c0_18, %c0_19, %c0_20] : memref<12x192x128xbf16, #tpu.memory_space<vmem>>, vector<1x192x128xbf16>
    %41 = vector.shape_cast %40 : vector<1x192x128xbf16> to vector<192x128xbf16>
    %cst_21 = arith.constant dense<0.000000e+00> : vector<8x128xf32>
    %42 = tpu.matmul %39, %41, %cst_21 {dimension_numbers = #tpu.dot_dimension_numbers<[1], [0], [0], [1], [0, 0, 1, 1], [], []>} : vector<8x192xbf16>, vector<192x128xbf16>, vector<8x128xf32> -> vector<8x128xf32>
    %43 = vector.broadcast %38 : vector<1x128xf32> to vector<8x128xf32>
    %44 = arith.addf %43, %42 : vector<8x128xf32>
    %45 = vector.extract_strided_slice %37 {offsets = [8, 0], sizes = [8, 192], strides = [1, 1]} : vector<112x192xbf16> to vector<8x192xbf16>
    %c1 = arith.constant 1 : index
    %c0_22 = arith.constant 0 : index
    %c0_23 = arith.constant 0 : index
    %46 = vector.load %arg8[%c1, %c0_22, %c0_23] : memref<12x192x128xbf16, #tpu.memory_space<vmem>>, vector<1x192x128xbf16>
    %47 = vector.shape_cast %46 : vector<1x192x128xbf16> to vector<192x128xbf16>
    %cst_24 = arith.constant dense<0.000000e+00> : vector<8x128xf32>
    %48 = tpu.matmul %45, %47, %cst_24 {dimension_numbers = #tpu.dot_dimension_numbers<[1], [0], [0], [1], [0, 0, 1, 1], [], []>} : vector<8x192xbf16>, vector<192x128xbf16>, vector<8x128xf32> -> vector<8x128xf32>
    %49 = arith.addf %44, %48 : vector<8x128xf32>
    %50 = vector.extract_strided_slice %37 {offsets = [16, 0], sizes = [8, 192], strides = [1, 1]} : vector<112x192xbf16> to vector<8x192xbf16>
    %c2 = arith.constant 2 : index
    %c0_25 = arith.constant 0 : index
    %c0_26 = arith.constant 0 : index
    %51 = vector.load %arg8[%c2, %c0_25, %c0_26] : memref<12x192x128xbf16, #tpu.memory_space<vmem>>, vector<1x192x128xbf16>
    %52 = vector.shape_cast %51 : vector<1x192x128xbf16> to vector<192x128xbf16>
    %cst_27 = arith.constant dense<0.000000e+00> : vector<8x128xf32>
    %53 = tpu.matmul %50, %52, %cst_27 {dimension_numbers = #tpu.dot_dimension_numbers<[1], [0], [0], [1], [0, 0, 1, 1], [], []>} : vector<8x192xbf16>, vector<192x128xbf16>, vector<8x128xf32> -> vector<8x128xf32>
    %54 = arith.addf %49, %53 : vector<8x128xf32>
    %55 = vector.extract_strided_slice %37 {offsets = [24, 0], sizes = [8, 192], strides = [1, 1]} : vector<112x192xbf16> to vector<8x192xbf16>
    %c3 = arith.constant 3 : index
    %c0_28 = arith.constant 0 : index
    %c0_29 = arith.constant 0 : index
    %56 = vector.load %arg8[%c3, %c0_28, %c0_29] : memref<12x192x128xbf16, #tpu.memory_space<vmem>>, vector<1x192x128xbf16>
    %57 = vector.shape_cast %56 : vector<1x192x128xbf16> to vector<192x128xbf16>
    %cst_30 = arith.constant dense<0.000000e+00> : vector<8x128xf32>
    %58 = tpu.matmul %55, %57, %cst_30 {dimension_numbers = #tpu.dot_dimension_numbers<[1], [0], [0], [1], [0, 0, 1, 1], [], []>} : vector<8x192xbf16>, vector<192x128xbf16>, vector<8x128xf32> -> vector<8x128xf32>
    %59 = arith.addf %54, %58 : vector<8x128xf32>
    %60 = vector.extract_strided_slice %37 {offsets = [32, 0], sizes = [8, 192], strides = [1, 1]} : vector<112x192xbf16> to vector<8x192xbf16>
    %c4 = arith.constant 4 : index
    %c0_31 = arith.constant 0 : index
    %c0_32 = arith.constant 0 : index
    %61 = vector.load %arg8[%c4, %c0_31, %c0_32] : memref<12x192x128xbf16, #tpu.memory_space<vmem>>, vector<1x192x128xbf16>
    %62 = vector.shape_cast %61 : vector<1x192x128xbf16> to vector<192x128xbf16>
    %cst_33 = arith.constant dense<0.000000e+00> : vector<8x128xf32>
    %63 = tpu.matmul %60, %62, %cst_33 {dimension_numbers = #tpu.dot_dimension_numbers<[1], [0], [0], [1], [0, 0, 1, 1], [], []>} : vector<8x192xbf16>, vector<192x128xbf16>, vector<8x128xf32> -> vector<8x128xf32>
    %64 = arith.addf %59, %63 : vector<8x128xf32>
    %65 = vector.extract_strided_slice %37 {offsets = [40, 0], sizes = [8, 192], strides = [1, 1]} : vector<112x192xbf16> to vector<8x192xbf16>
    %c5 = arith.constant 5 : index
    %c0_34 = arith.constant 0 : index
    %c0_35 = arith.constant 0 : index
    %66 = vector.load %arg8[%c5, %c0_34, %c0_35] : memref<12x192x128xbf16, #tpu.memory_space<vmem>>, vector<1x192x128xbf16>
    %67 = vector.shape_cast %66 : vector<1x192x128xbf16> to vector<192x128xbf16>
    %cst_36 = arith.constant dense<0.000000e+00> : vector<8x128xf32>
    %68 = tpu.matmul %65, %67, %cst_36 {dimension_numbers = #tpu.dot_dimension_numbers<[1], [0], [0], [1], [0, 0, 1, 1], [], []>} : vector<8x192xbf16>, vector<192x128xbf16>, vector<8x128xf32> -> vector<8x128xf32>
    %69 = arith.addf %64, %68 : vector<8x128xf32>
    %70 = vector.extract_strided_slice %37 {offsets = [48, 0], sizes = [8, 192], strides = [1, 1]} : vector<112x192xbf16> to vector<8x192xbf16>
    %c6 = arith.constant 6 : index
    %c0_37 = arith.constant 0 : index
    %c0_38 = arith.constant 0 : index
    %71 = vector.load %arg8[%c6, %c0_37, %c0_38] : memref<12x192x128xbf16, #tpu.memory_space<vmem>>, vector<1x192x128xbf16>
    %72 = vector.shape_cast %71 : vector<1x192x128xbf16> to vector<192x128xbf16>
    %cst_39 = arith.constant dense<0.000000e+00> : vector<8x128xf32>
    %73 = tpu.matmul %70, %72, %cst_39 {dimension_numbers = #tpu.dot_dimension_numbers<[1], [0], [0], [1], [0, 0, 1, 1], [], []>} : vector<8x192xbf16>, vector<192x128xbf16>, vector<8x128xf32> -> vector<8x128xf32>
    %74 = arith.addf %69, %73 : vector<8x128xf32>
    %75 = vector.extract_strided_slice %37 {offsets = [56, 0], sizes = [8, 192], strides = [1, 1]} : vector<112x192xbf16> to vector<8x192xbf16>
    %c7 = arith.constant 7 : index
    %c0_40 = arith.constant 0 : index
    %c0_41 = arith.constant 0 : index
    %76 = vector.load %arg8[%c7, %c0_40, %c0_41] : memref<12x192x128xbf16, #tpu.memory_space<vmem>>, vector<1x192x128xbf16>
    %77 = vector.shape_cast %76 : vector<1x192x128xbf16> to vector<192x128xbf16>
    %cst_42 = arith.constant dense<0.000000e+00> : vector<8x128xf32>
    %78 = tpu.matmul %75, %77, %cst_42 {dimension_numbers = #tpu.dot_dimension_numbers<[1], [0], [0], [1], [0, 0, 1, 1], [], []>} : vector<8x192xbf16>, vector<192x128xbf16>, vector<8x128xf32> -> vector<8x128xf32>
    %79 = arith.addf %74, %78 : vector<8x128xf32>
    %80 = vector.extract_strided_slice %37 {offsets = [64, 0], sizes = [8, 192], strides = [1, 1]} : vector<112x192xbf16> to vector<8x192xbf16>
    %c8 = arith.constant 8 : index
    %c0_43 = arith.constant 0 : index
    %c0_44 = arith.constant 0 : index
    %81 = vector.load %arg8[%c8, %c0_43, %c0_44] : memref<12x192x128xbf16, #tpu.memory_space<vmem>>, vector<1x192x128xbf16>
    %82 = vector.shape_cast %81 : vector<1x192x128xbf16> to vector<192x128xbf16>
    %cst_45 = arith.constant dense<0.000000e+00> : vector<8x128xf32>
    %83 = tpu.matmul %80, %82, %cst_45 {dimension_numbers = #tpu.dot_dimension_numbers<[1], [0], [0], [1], [0, 0, 1, 1], [], []>} : vector<8x192xbf16>, vector<192x128xbf16>, vector<8x128xf32> -> vector<8x128xf32>
    %84 = arith.addf %79, %83 : vector<8x128xf32>
    %85 = vector.extract_strided_slice %37 {offsets = [72, 0], sizes = [8, 192], strides = [1, 1]} : vector<112x192xbf16> to vector<8x192xbf16>
    %c9 = arith.constant 9 : index
    %c0_46 = arith.constant 0 : index
    %c0_47 = arith.constant 0 : index
    %86 = vector.load %arg8[%c9, %c0_46, %c0_47] : memref<12x192x128xbf16, #tpu.memory_space<vmem>>, vector<1x192x128xbf16>
    %87 = vector.shape_cast %86 : vector<1x192x128xbf16> to vector<192x128xbf16>
    %cst_48 = arith.constant dense<0.000000e+00> : vector<8x128xf32>
    %88 = tpu.matmul %85, %87, %cst_48 {dimension_numbers = #tpu.dot_dimension_numbers<[1], [0], [0], [1], [0, 0, 1, 1], [], []>} : vector<8x192xbf16>, vector<192x128xbf16>, vector<8x128xf32> -> vector<8x128xf32>
    %89 = arith.addf %84, %88 : vector<8x128xf32>
    %90 = vector.extract_strided_slice %37 {offsets = [80, 0], sizes = [8, 192], strides = [1, 1]} : vector<112x192xbf16> to vector<8x192xbf16>
    %c10 = arith.constant 10 : index
    %c0_49 = arith.constant 0 : index
    %c0_50 = arith.constant 0 : index
    %91 = vector.load %arg8[%c10, %c0_49, %c0_50] : memref<12x192x128xbf16, #tpu.memory_space<vmem>>, vector<1x192x128xbf16>
    %92 = vector.shape_cast %91 : vector<1x192x128xbf16> to vector<192x128xbf16>
    %cst_51 = arith.constant dense<0.000000e+00> : vector<8x128xf32>
    %93 = tpu.matmul %90, %92, %cst_51 {dimension_numbers = #tpu.dot_dimension_numbers<[1], [0], [0], [1], [0, 0, 1, 1], [], []>} : vector<8x192xbf16>, vector<192x128xbf16>, vector<8x128xf32> -> vector<8x128xf32>
    %94 = arith.addf %89, %93 : vector<8x128xf32>
    %95 = vector.extract_strided_slice %37 {offsets = [88, 0], sizes = [8, 192], strides = [1, 1]} : vector<112x192xbf16> to vector<8x192xbf16>
    %c11 = arith.constant 11 : index
    %c0_52 = arith.constant 0 : index
    %c0_53 = arith.constant 0 : index
    %96 = vector.load %arg8[%c11, %c0_52, %c0_53] : memref<12x192x128xbf16, #tpu.memory_space<vmem>>, vector<1x192x128xbf16>
    %97 = vector.shape_cast %96 : vector<1x192x128xbf16> to vector<192x128xbf16>
    %cst_54 = arith.constant dense<0.000000e+00> : vector<8x128xf32>
    %98 = tpu.matmul %95, %97, %cst_54 {dimension_numbers = #tpu.dot_dimension_numbers<[1], [0], [0], [1], [0, 0, 1, 1], [], []>} : vector<8x192xbf16>, vector<192x128xbf16>, vector<8x128xf32> -> vector<8x128xf32>
    %99 = arith.addf %94, %98 : vector<8x128xf32>
    %cst_55 = arith.constant dense<0xFF800000> : vector<8xf32>
    %100 = vector.multi_reduction <maximumf>, %99, %cst_55 [1] : vector<8x128xf32> to vector<8xf32>
    %101 = vector.shape_cast %100 : vector<8xf32> to vector<8x1xf32>
    %102 = vector.broadcast %101 : vector<8x1xf32> to vector<8x128xf32>
    %103 = arith.subf %99, %102 : vector<8x128xf32>
    %104 = math.exp %103 : vector<8x128xf32>
    %cst_56 = arith.constant dense<0.000000e+00> : vector<8xf32>
    %105 = vector.multi_reduction <add>, %104, %cst_56 [1] : vector<8x128xf32> to vector<8xf32>
    %106 = vector.shape_cast %105 : vector<8xf32> to vector<8x1xf32>
    %107 = math.log %106 : vector<8x1xf32>
    %108 = vector.broadcast %107 : vector<8x1xf32> to vector<8x128xf32>
    %109 = arith.subf %103, %108 : vector<8x128xf32>
    %c0_57 = arith.constant 0 : index
    %c0_58 = arith.constant 0 : index
    %110 = vector.load %arg10[%c0_57, %c0_58] : memref<8x128xf32, #tpu.memory_space<vmem>>, vector<8x128xf32>
    tpu.vector_store %arg10[%c0_57, %c0_58], %109 {strides = array<i32>} : memref<8x128xf32, #tpu.memory_space<vmem>>, vector<8x128xf32>,
    return
  }
  func.func @transform_0(%arg0: i32) -> (i32, i32) {
    %c0_i32 = arith.constant 0 : i32
    %c0_i32_0 = arith.constant 0 : i32
    return %arg0, %c0_i32 : i32, i32
  }
  func.func @transform_1(%arg0: i32) -> (i32, i32) {
    %c0_i32 = arith.constant 0 : i32
    %c0_i32_0 = arith.constant 0 : i32
    %c0_i32_1 = arith.constant 0 : i32
    return %c0_i32, %c0_i32_0 : i32, i32
  }
  func.func @transform_2(%arg0: i32) -> (i32, i32) {
    %c0_i32 = arith.constant 0 : i32
    %c0_i32_0 = arith.constant 0 : i32
    %c0_i32_1 = arith.constant 0 : i32
    return %c0_i32, %c0_i32_0 : i32, i32
  }
  func.func @transform_3(%arg0: i32) -> (i32, i32) {
    %c0_i32 = arith.constant 0 : i32
    %c0_i32_0 = arith.constant 0 : i32
    %c0_i32_1 = arith.constant 0 : i32
    return %c0_i32, %c0_i32_0 : i32, i32
  }
  func.func @transform_4(%arg0: i32) -> (i32, i32) {
    %c0_i32 = arith.constant 0 : i32
    %c0_i32_0 = arith.constant 0 : i32
    %c0_i32_1 = arith.constant 0 : i32
    return %c0_i32, %c0_i32_0 : i32, i32
  }
  func.func @transform_5(%arg0: i32) -> (i32, i32) {
    %c0_i32 = arith.constant 0 : i32
    %c0_i32_0 = arith.constant 0 : i32
    %c0_i32_1 = arith.constant 0 : i32
    return %c0_i32, %c0_i32_0 : i32, i32
  }
  func.func @transform_6(%arg0: i32) -> (i32, i32) {
    %c0_i32 = arith.constant 0 : i32
    %c0_i32_0 = arith.constant 0 : i32
    %c0_i32_1 = arith.constant 0 : i32
    return %c0_i32, %c0_i32_0 : i32, i32
  }
  func.func @transform_7(%arg0: i32) -> (i32, i32, i32) {
    %c0_i32 = arith.constant 0 : i32
    %c0_i32_0 = arith.constant 0 : i32
    %c0_i32_1 = arith.constant 0 : i32
    %c0_i32_2 = arith.constant 0 : i32
    return %c0_i32, %c0_i32_0, %c0_i32_1 : i32, i32, i32
  }
  func.func @transform_8(%arg0: i32) -> (i32, i32) {
    %c0_i32 = arith.constant 0 : i32
    %c0_i32_0 = arith.constant 0 : i32
    %c0_i32_1 = arith.constant 0 : i32
    return %c0_i32, %c0_i32_0 : i32, i32
  }
  func.func @transform_9(%arg0: i32) -> (i32, i32) {
    %c0_i32 = arith.constant 0 : i32
    %c0_i32_0 = arith.constant 0 : i32
    return %arg0, %c0_i32 : i32, i32
  }
}

</mosaic_0001>

<bundles_post_ra>
// kernel: lenet5_forward.1
= control target key start
LH: loop header
LB: loop body
LE: loop exit
PB: predicated region body
PF: predicated region fallthrough
CT: control target
= control target key end

     0   :  { %v5341_v0 = vmov 0   ;;  %s5342_s10 = smov 56   ;;  %vm648_vm0 = vcmask 1043456   ;;  %s5343_s16 = smov 112   ;;  %vm355_vm1 = vcmask 457728   ;;  %vm370_vm2 = vcmask 916480   ;;  %s7215_s2 = inlined_call_operand.vmem [shape: f32[112,1], index: 2, kind: input, shape index: {}]   ;;  %s7216_s1 = inlined_call_operand.vmem [shape: f32[112,1], index: 1, kind: input, shape index: {}]   ;;  %s7217_s0 = inlined_call_operand.vmem [shape: f32[112,56], index: 0, kind: input, shape index: {}]   ;;  %s7218_s3 = inlined_call_operand.vmem [shape: bf16[168,336], index: 3, kind: input, shape index: {}]   ;;  %s7219_s5 = inlined_call_operand.vmem [shape: bf16[1008,192], index: 5, kind: input, shape index: {}]   ;;  %s7220_s4 = inlined_call_operand.vmem [shape: f32[1,336], index: 4, kind: input, shape index: {}]   ;;  %s7221_s7 = inlined_call_operand.vmem [shape: bf16[12,192,128], index: 7, kind: input, shape index: {}]   ;;  %s7222_s6 = inlined_call_operand.vmem [shape: f32[1,192], index: 6, kind: input, shape index: {}]   ;;  %s7223_s8 = inlined_call_operand.vmem [shape: f32[1,128], index: 8, kind: input, shape index: {}]   ;;  %s7224_s9 = inlined_call_operand.vmem [shape: f32[8,128], index: 9, kind: output, shape index: {}]  }
   0x1   :  { %4890 = vset.pattern.permute.xlu1 %v5341_v0  ;;  %4889 = vset.pattern.permute.xlu0 %v5341_v0  ;;  %v147_v1 = vld [vmem:[%s7215_s2 + $0x10] sm:$0xff]  ;;  %v145_v2 = vld [vmem:[%s7215_s2] sm:$0xff]  ;;  %v148_v3 = vld [vmem:[%s7215_s2 + $0x18] sm:$0xff]  ;;  %vm626_vm3 = vcmask 326656   ;;  %s5344_s25 = smov 80   ;;  %s5345_s27 = smov 32  }
   0x2   :  { %171 = vperm.xlu1 %4890, %v147_v1   ;;  %161 = vperm.xlu0 %4889, %v145_v2   ;;  %v146_v4 = vld [vmem:[%s7215_s2 + $0x8] sm:$0xff]  ;;  %v149_v6 = vld [vmem:[%s7215_s2 + $0x20] sm:$0xff]  ;;  %v152_v7 = vld [vmem:[%s7215_s2 + $0x38] sm:$0xff]  ;;  %vm1028_vm4 = vcmask 654336   ;;  %vm1099_vm5 = vcmask 261120   ;;  %vm2497_vm6 = vcmask 523264  }
   0x3   :  { %2794 = vmatprep.subr.bf16.mxu1 %v5341_v0  ;;  %v150_v5 = vld [vmem:[%s7215_s2 + $0x28] sm:$0xff]  ;;  %v151_v8 = vld [vmem:[%s7215_s2 + $0x30] sm:$0xff]  ;;  %v153_v10 = vld [vmem:[%s7215_s2 + $0x40] sm:$0xff] }
   0x4   :  { %v154_v9 = vld [vmem:[%s7215_s2 + $0x48] sm:$0xff]  ;;  %v156_v11 = vld [vmem:[%s7215_s2 + $0x58] sm:$0xff]  ;;  %v155_v12 = vld [vmem:[%s7215_s2 + $0x50] sm:$0xff] }
   0x5   :  { %v158_v13 = vld [vmem:[%s7215_s2 + $0x68] sm:$0xff]  ;;  %v157_v14 = vld [vmem:[%s7215_s2 + $0x60] sm:$0xff]  ;;  %v50_v17 = vld [vmem:[%s7216_s1 + $0x18] sm:$0xff] }
   0x6   :  { %176 = vperm.xlu1 %4890, %v148_v3   ;;  %166 = vperm.xlu0 %4889, %v146_v4   ;;  %v48_v15 = vld [vmem:[%s7216_s1 + $0x8] sm:$0xff]  ;;  %v47_v16 = vld [vmem:[%s7216_s1] sm:$0xff]  ;;  %v49_v18 = vld [vmem:[%s7216_s1 + $0x10] sm:$0xff] }
   0x7   :  { %v5456_v19 = vld [vmem:[%s7217_s0] sm:$0xff]  ;;  %v5461_v20 = vld [vmem:[%s7217_s0 + $0x8] sm:$0xff]  ;;  %v5468_v22 = vld [vmem:[%s7217_s0 + $0x10] sm:$0xff] }
   0x8   :  { %v4891_v21 = vpack.i.bf16 %v5461_v20, %v5456_v19  ;;  %v5473_v23 = vld [vmem:[%s7217_s0 + $0x18] sm:$0xff]  ;;  %v51_v25 = vld [vmem:[%s7216_s1 + $0x20] sm:$0xff]  ;;  %v53_v26 = vld [vmem:[%s7216_s1 + $0x30] sm:$0xff] }
   0x9   :  { %v4901_v24 = vpack.i.bf16 %v5473_v23, %v5468_v22  ;;  %v5488_v27 = vld [vmem:[%s7217_s0 + $0x20] sm:$0xff]  ;;  %v5493_v28 = vld [vmem:[%s7217_s0 + $0x28] sm:$0xff]  ;;  %v5504_v31 = vld [vmem:[%s7217_s0 + $0x30] sm:$0xff] }
   0xa   :  { %186 = vperm.xlu1 %4890, %v150_v5   ;;  %181 = vperm.xlu0 %4889, %v149_v6   ;;  %v4911_v29 = vpack.i.bf16 %v5493_v28, %v5488_v27  ;;  %v55_v30 = vld [vmem:[%s7216_s1 + $0x40] sm:$0xff]  ;;  %v5509_v32 = vld [vmem:[%s7217_s0 + $0x38] sm:$0xff]  ;;  %v57_v34 = vld [vmem:[%s7216_s1 + $0x50] sm:$0xff] }
   0xb   :  { %v4921_v33 = vpack.i.bf16 %v5509_v32, %v5504_v31  ;;  %v5520_v35 = vld [vmem:[%s7217_s0 + $0x40] sm:$0xff]  ;;  %v5525_v36 = vld [vmem:[%s7217_s0 + $0x48] sm:$0xff]  ;;  %v5536_v39 = vld [vmem:[%s7217_s0 + $0x50] sm:$0xff] }
   0xc   :  { %v4931_v37 = vpack.i.bf16 %v5525_v36, %v5520_v35  ;;  %v59_v38 = vld [vmem:[%s7216_s1 + $0x60] sm:$0xff]  ;;  %v5541_v40 = vld [vmem:[%s7217_s0 + $0x58] sm:$0xff]  ;;  %v5553_v43 = vld [vmem:[%s7217_s0 + $0x68] sm:$0xff] }
   0xd   :  { %v4941_v41 = vpack.i.bf16 %v5541_v40, %v5536_v39  ;;  %v5548_v42 = vld [vmem:[%s7217_s0 + $0x60] sm:$0xff]  ;;  %v4964_v47 = vld [vmem:[%s7218_s3 + $0x1c] ss:$12 sps:$4 sm:$0xff]   ;;  %v4970_v51 = vld [vmem:[%s7218_s3 + $0x4c] ss:$12 sps:$4 sm:$0xff]  }
   0xe   :  { %196 = vperm.xlu1 %4890, %v152_v7   ;;  %191 = vperm.xlu0 %4889, %v151_v8   ;;  %v4951_v44 = vpack.i.bf16 %v5553_v43, %v5548_v42  ;;  %v4961_v45 = vld [vmem:[%s7218_s3 + $0x4] ss:$12 sps:$4 sm:$0xff]   ;;  %v4963_v46 = vld [vmem:[%s7218_s3] ss:$12 sps:$4 sm:$0xff]   ;;  %v4972_v52 = vld [vmem:[%s7218_s3 + $0x48] ss:$12 sps:$4 sm:$0xff]  }
   0xf   :  { %658 = vmatprep.subr.bf16.mxu0 %v4961_v45  ;;  %v4966_v48 = vld [vmem:[%s7218_s3 + $0x18] ss:$12 sps:$4 sm:$0xff]   ;;  %v4967_v49 = vld [vmem:[%s7218_s3 + $0x34] ss:$12 sps:$4 sm:$0xff]   ;;  %v4969_v50 = vld [vmem:[%s7218_s3 + $0x30] ss:$12 sps:$4 sm:$0xff]  }
  0x10   :  { %659 = vmatpush1.bf16.msra.mxu0 %v4963_v46  ;;  %v4973_v53 = vld [vmem:[%s7218_s3 + $0x64] ss:$12 sps:$4 sm:$0xff]   ;;  %v4975_v54 = vld [vmem:[%s7218_s3 + $0x60] ss:$12 sps:$4 sm:$0xff]   ;;  %v4976_v55 = vld [vmem:[%s7218_s3 + $0x7c] ss:$12 sps:$4 sm:$0xff]  }
  0x11   :  { %660 = vmatprep.subr.bf16.mxu0 %v4964_v47  ;;  %v4978_v56 = vld [vmem:[%s7218_s3 + $0x78] ss:$12 sps:$4 sm:$0xff]   ;;  %v4979_v57 = vld [vmem:[%s7218_s3 + $0x94] ss:$12 sps:$4 sm:$0xff]   ;;  %v4981_v58 = vld [vmem:[%s7218_s3 + $0x90] ss:$12 sps:$4 sm:$0xff]  }
  0x12   :  { %206 = vperm.xlu1 %4890, %v154_v9   ;;  %201 = vperm.xlu0 %4889, %v153_v10   ;;  %v4982_v59 = vld [vmem:[%s7218_s3 + $0xac] ss:$12 sps:$4 sm:$0xff]   ;;  %v4984_v60 = vld [vmem:[%s7218_s3 + $0xa8] ss:$12 sps:$4 sm:$0xff]   ;;  %v4985_v61 = vld [vmem:[%s7218_s3 + $0xc4] ss:$12 sps:$4 sm:$0xff]  }
  0x13   :  { %v4987_v62 = vld [vmem:[%s7218_s3 + $0xc0] ss:$12 sps:$4 sm:$0xff]   ;;  %v4988_v63 = vld [vmem:[%s7218_s3 + $0xdc] ss:$12 sps:$4 sm:$0xff]   ;;  %v4990_v1 = vld [vmem:[%s7218_s3 + $0xd8] ss:$12 sps:$4 sm:$0xff]  }
  0x14   :  { %661 = vmatpush1.bf16.msra.mxu0 %v4966_v48  ;;  %v439_v2 = vld [vmem:[%s7218_s3 + $0xf0] sm:$0xff]  ;;  %v58_v45 = vld [vmem:[%s7216_s1 + $0x58] sm:$0xff] }
  0x15   :  { %662 = vmatprep.subr.bf16.mxu0 %v4967_v49  ;;  %v4175_v3 = vcombine.high %v439_v2, %v439_v2  ;;  %v4174_v4 = vcombine.low %v439_v2, %v439_v2 }
  0x16   :  { %216 = vperm.xlu1 %4890, %v156_v11   ;;  %211 = vperm.xlu0 %4889, %v155_v12  }
  0x17   :  { %v650_v5 = vsel %vm648_vm0, %v4174_v4, 0 }
  0x18   :  { %663 = vmatpush1.bf16.msra.mxu0 %v4969_v50 }
  0x19   :  { %664 = vmatprep.subr.bf16.mxu0 %v4970_v51  ;;  %v60_v51 = vld [vmem:[%s7216_s1 + $0x68] sm:$0xff] }
  0x1a   :  { %226 = vperm.xlu1 %4890, %v158_v13   ;;  %221 = vperm.xlu0 %4889, %v157_v14  }
  0x1c   :  { %665 = vmatpush1.bf16.msra.mxu0 %v4972_v52 }
  0x1d   :  { %666 = vmatprep.subr.bf16.mxu0 %v4973_v53 }
  0x1e   :  { %68 = vperm.xlu1 %4890, %v48_v15   ;;  %63 = vperm.xlu0 %4889, %v47_v16   ;;  %v52_v16 = vld [vmem:[%s7216_s1 + $0x28] sm:$0xff] }
  0x20   :  { %667 = vmatpush1.bf16.msra.mxu0 %v4975_v54 }
  0x21   :  { %668 = vmatprep.subr.bf16.mxu0 %v4976_v55 }
  0x22   :  { %78 = vperm.xlu1 %4890, %v50_v17   ;;  %73 = vperm.xlu0 %4889, %v49_v18  }
  0x24   :  { %669 = vmatpush1.bf16.msra.mxu0 %v4978_v56 }
  0x25   :  { %670 = vmatprep.subr.bf16.mxu0 %v4979_v57 }
  0x26   :  { %4892 = vrot.lane.b32.xlu0 %v4891_v21, %s5342_s10  ;;  %v54_v21 = vld [vmem:[%s7216_s1 + $0x38] sm:$0xff] }
  0x28   :  { %671 = vmatpush1.bf16.msra.mxu0 %v4981_v58 }
  0x29   :  { %672 = vmatprep.subr.bf16.mxu0 %v4982_v59 }
  0x2a   :  { %4902 = vrot.lane.b32.xlu0 %v4901_v24, %s5342_s10 }
  0x2c   :  { %673 = vmatpush1.bf16.msra.mxu0 %v4984_v60 }
  0x2d   :  { %674 = vmatprep.subr.bf16.mxu0 %v4985_v61 }
  0x2e   :  { %83 = vperm.xlu0 %4889, %v51_v25  }
  0x30   :  { %675 = vmatpush1.bf16.msra.mxu0 %v4987_v62 }
  0x31   :  { %676 = vmatprep.subr.bf16.mxu0 %v4988_v63 }
  0x32   :  { %93 = vperm.xlu0 %4889, %v53_v26  }
  0x34   :  { %677 = vmatpush1.bf16.msra.mxu0 %v4990_v1 }
  0x35   :  { %4177 = vmatprep.subr.msk.bf16.mxu0 %vm648_vm0, %v4175_v3 }
  0x36   :  { %4912 = vrot.lane.b32.xlu0 %v4911_v29, %s5342_s10 }
  0x38   :  { %679 = vmatpush1.bf16.msra.mxu0 %v650_v5 }
  0x39   :  { %761 = vmatprep.subr.bf16.mxu0 %v5341_v0 }
  0x3a   :  { %103 = vperm.xlu0 %4889, %v55_v30  }
  0x3e   :  { %4922 = vrot.lane.b32.xlu0 %v4921_v33, %s5342_s10  ;;  %v56_v33 = vld [vmem:[%s7216_s1 + $0x48] sm:$0xff] }
  0x42   :  { %113 = vperm.xlu0 %4889, %v57_v34  }
  0x46   :  { %4932 = vrot.lane.b32.xlu0 %v4931_v37, %s5342_s10 }
  0x4a   :  { %123 = vperm.xlu0 %4889, %v59_v38  }
  0x4e   :  { %4942 = vrot.lane.b32.xlu0 %v4941_v41, %s5342_s10 }
  0x52   :  { %4952 = vrot.lane.b32.xlu0 %v4951_v44, %s5342_s10 }
  0x81   :  { %v172_v6 = vpop.permute.xlu1 %171  ;;  %v162_v7 = vpop.permute.xlu0 %161 }
  0x82   :  { %v229_v10 = vmul.f32 %v162_v7, %v5461_v20  ;;  %v231_v12 = vmul.f32 %v172_v6, %v5473_v23 }
  0x85   :  { %v177_v8 = vpop.permute.xlu1 %176  ;;  %v167_v9 = vpop.permute.xlu0 %166 }
  0x86   :  { %v230_v11 = vmul.f32 %v167_v9, %v5468_v22  ;;  %v232_v13 = vmul.f32 %v177_v8, %v5488_v27 }
  0x88   :  { %v4896_v14 = vpack.i.bf16 %v230_v11, %v229_v10  ;;  %v4906_v15 = vpack.i.bf16 %v232_v13, %v231_v12 }
  0x89   :  { %v187_v17 = vpop.permute.xlu1 %186  ;;  %v182_v18 = vpop.permute.xlu0 %181 }
  0x8a   :  { %4897 = vrot.lane.b32.xlu1 %v4896_v14, %s5343_s16  ;;  %v234_v24 = vmul.f32 %v187_v17, %v5504_v31  ;;  %v233_v25 = vmul.f32 %v182_v18, %v5493_v28 }
  0x8c   :  { %v4916_v26 = vpack.i.bf16 %v234_v24, %v233_v25 }
  0x8d   :  { %v197_v29 = vpop.permute.xlu1 %196  ;;  %v192_v30 = vpop.permute.xlu0 %191 }
  0x8e   :  { %4907 = vrot.lane.b32.xlu1 %v4906_v15, %s5343_s16  ;;  %v236_v34 = vmul.f32 %v197_v29, %v5520_v35  ;;  %v235_v37 = vmul.f32 %v192_v30, %v5509_v32 }
  0x90   :  { %v4926_v38 = vpack.i.bf16 %v236_v34, %v235_v37 }
  0x91   :  { %v207_v41 = vpop.permute.xlu1 %206  ;;  %v202_v44 = vpop.permute.xlu0 %201 }
  0x92   :  { %88 = vperm.xlu1 %4890, %v52_v16   ;;  %v238_v46 = vmul.f32 %v207_v41, %v5536_v39  ;;  %v237_v47 = vmul.f32 %v202_v44, %v5525_v36 }
  0x94   :  { %v4936_v50 = vpack.i.bf16 %v238_v46, %v237_v47  ;;  %v4997_v46 = vld [vmem:[%s7218_s3 + $0x68] ss:$12 sps:$4 sm:$0xff]  }
  0x95   :  { %v217_v48 = vpop.permute.xlu1 %216  ;;  %v212_v49 = vpop.permute.xlu0 %211 }
  0x96   :  { %98 = vperm.xlu1 %4890, %v54_v21   ;;  %v240_v52 = vmul.f32 %v217_v48, %v5548_v42  ;;  %v239_v53 = vmul.f32 %v212_v49, %v5541_v40  ;;  %v4998_v49 = vld [vmem:[%s7218_s3 + $0x80] ss:$12 sps:$4 sm:$0xff]  }
  0x98   :  { %v4946_v56 = vpack.i.bf16 %v240_v52, %v239_v53  ;;  %v4999_v52 = vld [vmem:[%s7218_s3 + $0x98] ss:$12 sps:$4 sm:$0xff]  }
  0x99   :  { %v227_v54 = vpop.permute.xlu1 %226  ;;  %v222_v55 = vpop.permute.xlu0 %221 }
  0x9a   :  { %4917 = vrot.lane.b32.xlu1 %v4916_v26, %s5343_s16  ;;  %v242_v57 = vmul.f32 %v227_v54, %v5456_v19  ;;  %v241_v58 = vmul.f32 %v222_v55, %v5553_v43 }
  0x9c   :  { %v4956_v59 = vpack.i.bf16 %v242_v57, %v241_v58 }
  0x9d   :  { %v64_v60 = vpop.permute.xlu0 %63  ;;  %v69_v63 = vpop.permute.xlu1 %68 }
  0x9e   :  { %108 = vperm.xlu1 %4890, %v56_v33   ;;  %v132_v5 = vmul.f32 %v69_v63, %v5456_v19  ;;  %v131_v6 = vmul.f32 %v64_v60, %v5553_v43  ;;  %v4993_v19 = vld [vmem:[%s7218_s3 + $0x8] ss:$12 sps:$4 sm:$0xff]   ;;  %v4994_v33 = vld [vmem:[%s7218_s3 + $0x20] ss:$12 sps:$4 sm:$0xff]  }
  0xa1   :  { %v74_v61 = vpop.permute.xlu0 %73  ;;  %v79_v2 = vpop.permute.xlu1 %78 }
  0xa2   :  { %4927 = vrot.lane.b32.xlu1 %v4926_v38, %s5343_s16  ;;  %v134_v25 = vmul.f32 %v79_v2, %v5468_v22  ;;  %v133_v26 = vmul.f32 %v74_v61, %v5461_v20  ;;  %v4995_v38 = vld [vmem:[%s7218_s3 + $0x38] ss:$12 sps:$4 sm:$0xff]   ;;  %v5000_v61 = vld [vmem:[%s7218_s3 + $0xb0] ss:$12 sps:$4 sm:$0xff]  }
  0xa5   :  { %v4893_v62 = vpop.permute.xlu0 %4892 }
  0xa6   :  { %118 = vperm.xlu1 %4890, %v58_v45   ;;  %v4895_v3 = vunpack.i.h.bf16 %v4893_v62  ;;  %v4894_v4 = vunpack.i.l.bf16 %v4893_v62  ;;  %v4996_v45 = vld [vmem:[%s7218_s3 + $0x50] ss:$12 sps:$4 sm:$0xff]  }
  0xa8   :  { %v356_v11 = vsel %vm355_vm1, %v131_v6, %v4894_v4  ;;  %v357_v12 = vsel %vm355_vm1, %v132_v5, %v4895_v3  ;;  %v5001_v4 = vld [vmem:[%s7218_s3 + $0xc8] ss:$12 sps:$4 sm:$0xff]  }
  0xa9   :  { %v4903_v1 = vpop.permute.xlu0 %4902 }
  0xaa   :  { %4937 = vrot.lane.b32.xlu1 %v4936_v50, %s5343_s16  ;;  %v4905_v43 = vunpack.i.h.bf16 %v4903_v1  ;;  %v4904_v16 = vunpack.i.l.bf16 %v4903_v1 }
  0xac   :  { %v359_v34 = vsel %vm355_vm1, %v134_v25, %v4905_v43  ;;  %v358_v37 = vsel %vm355_vm1, %v133_v26, %v4904_v16 }
  0xad   :  { %v84_v7 = vpop.permute.xlu0 %83 }
  0xae   :  { %128 = vperm.xlu1 %4890, %v60_v51   ;;  %v135_v55 = vmul.f32 %v84_v7, %v5473_v23 }
  0xb1   :  { %v94_v29 = vpop.permute.xlu0 %93 }
  0xb2   :  { %4947 = vrot.lane.b32.xlu1 %v4946_v56, %s5343_s16 }
  0xb5   :  { %v4913_v41 = vpop.permute.xlu0 %4912 }
  0xb6   :  { %4957 = vrot.lane.b32.xlu1 %v4956_v59, %s5343_s16  ;;  %v4914_v53 = vunpack.i.l.bf16 %v4913_v41  ;;  %v4915_v56 = vunpack.i.h.bf16 %v4913_v41 }
  0xb8   :  { %v360_v62 = vsel %vm355_vm1, %v135_v55, %v4914_v53 }
  0xb9   :  { %v104_v47 = vpop.permute.xlu0 %103 }
  0xbd   :  { %v4923_v50 = vpop.permute.xlu0 %4922 }
  0xbe   :  { %v4924_v5 = vunpack.i.l.bf16 %v4923_v50 }
  0xc1   :  { %v5716_v58 = vpop.permute.xlu0 %113 }
  0xc2   :  { %v141_v53 = vmul.f32 %v5716_v58, %v5525_v36 }
  0xc5   :  { %v4933_v7 = vpop.permute.xlu0 %4932 }
  0xc6   :  { %v4934_v25 = vunpack.i.l.bf16 %v4933_v7 }
  0xfc   :  { %v4898_v8 = vpop.permute.xlu1 %4897 }
  0xfd   :  { %v4900_v9 = vunpack.i.h.bf16 %v4898_v8  ;;  %v4899_v10 = vunpack.i.l.bf16 %v4898_v8  ;;  %v137_v8 = vmul.f32 %v94_v29, %v5493_v28  ;;  %v5006_v29 = vld [vmem:[%s7219_s5 + $0x4] ss:$8 sps:$4 sm:$0xff]  }
  0xff   :  { %v5665_v13 = vpack.c.bf16 %v4900_v9, %v4899_v10  ;;  %v371_v14 = vsel %vm370_vm2, %v356_v11, %v4899_v10  ;;  %v372_v15 = vsel %vm370_vm2, %v357_v12, %v4900_v9  ;;  %v4925_v9 = vunpack.i.h.bf16 %v4923_v50 }
 0x100   :  { %v4908_v17 = vpop.permute.xlu1 %4907  ;;  %v5672_v18 = vpack.c.bf16 %v372_v15, %v371_v14  ;;  %v5002_v14 = vld [vmem:[%s7218_s3 + $0xe0] ss:$12 sps:$4 sm:$0xff]   ;;  %v362_v15 = vsel %vm355_vm1, %v137_v8, %v4924_v5 }
 0x101   :  { %v4910_v21 = vunpack.i.h.bf16 %v4908_v17  ;;  %v4909_v24 = vunpack.i.l.bf16 %v4908_v17  ;;  %4178 = vmatprep.mubr.msk.bf16.mxu0 %vm626_vm3, %v5665_v13 }
 0x102   :  { %691 = vmatmul.mubr.bf16.vlgmr.msra.gmra.mrb[0].mxu0 %v5672_v18 }
 0x103   :  { %v5679_v30 = vpack.c.bf16 %v4910_v21, %v4909_v24  ;;  %762 = vmatpush1.bf16.msra.mxu0 %v4993_v19  ;;  %v373_v20 = vsel %vm370_vm2, %v358_v37, %v4909_v24  ;;  %v374_v22 = vsel %vm370_vm2, %v359_v34, %v4910_v21  ;;  %v5003_v19 = vld [vmem:[%s7218_s3 + $0xf8] ss:$0 sps:$4 sm:$0xff]   ;;  %v124_v24 = vpop.permute.xlu0 %123  ;;  %v4935_v34 = vunpack.i.h.bf16 %v4933_v7 }
 0x104   :  { %763 = vmatprep.subr.bf16.mxu0 %v5341_v0  ;;  %v5694_v44 = vpack.c.bf16 %v374_v22, %v373_v20  ;;  %v656_v20 = vsel %vm648_vm0, %v5003_v19, 0  ;;  %v143_v5 = vmul.f32 %v124_v24, %v5541_v40  ;;  %v5004_v40 = vld [vmem:[%s7219_s5] ss:$8 sps:$4 sm:$0xff]   ;;  %v5024_v19 = vld [vmem:[%s7219_s5 + $0x64] ss:$8 sps:$4 sm:$0xff]  }
 0x105   :  { %4179 = vmatprep.mubr.msk.bf16.mxu0 %vm626_vm3, %v5679_v30  ;;  %v5031_v24 = vld [vmem:[%s7219_s5 + $0x90] ss:$8 sps:$4 sm:$0xff]  }
 0x107   :  { %764 = vmatpush1.bf16.msra.mxu0 %v4994_v33  ;;  %v139_v33 = vmul.f32 %v104_v47, %v5509_v32 }
 0x108   :  { %765 = vmatprep.subr.bf16.mxu0 %v5341_v0 }
 0x109   :  { %v364_v41 = vsel %vm355_vm1, %v139_v33, %v4934_v25  ;;  %v5036_v25 = vld [vmem:[%s7219_s5 + $0xa4] ss:$8 sps:$4 sm:$0xff]   ;;  %v5037_v33 = vld [vmem:[%s7219_s5 + $0xb0] ss:$8 sps:$4 sm:$0xff]  }
 0x10a   :  { %701 = vmatmul.mubr.bf16.gmra.mrb[4].mxu0 %v5694_v44 }
 0x10b   :  { %766 = vmatpush1.bf16.msra.mxu0 %v4995_v38 }
 0x10c   :  { %767 = vmatprep.subr.bf16.mxu0 %v5341_v0 }
 0x10f   :  { %768 = vmatpush1.bf16.msra.mxu0 %v4996_v45  ;;  %v4943_v45 = vpop.permute.xlu0 %4942 }
 0x110   :  { %769 = vmatprep.subr.bf16.mxu0 %v5341_v0  ;;  %v4945_v50 = vunpack.i.h.bf16 %v4943_v45 }
 0x111   :  { %v89_v48 = vpop.permute.xlu1 %88 }
 0x112   :  { %v136_v54 = vmul.f32 %v89_v48, %v5488_v27 }
 0x113   :  { %770 = vmatpush1.bf16.msra.mxu0 %v4997_v46  ;;  %v4953_v55 = vpop.permute.xlu0 %4952 }
 0x114   :  { %771 = vmatprep.subr.bf16.mxu0 %v5341_v0  ;;  %v361_v63 = vsel %vm355_vm1, %v136_v54, %v4915_v56 }
 0x115   :  { %v99_v51 = vpop.permute.xlu1 %98 }
 0x116   :  { %v138_v6 = vmul.f32 %v99_v51, %v5504_v31  ;;  %v4944_v51 = vunpack.i.l.bf16 %v4943_v45  ;;  %v5049_v45 = vld [vmem:[%s7219_s5 + $0xf0] ss:$8 sps:$4 sm:$0xff]  }
 0x117   :  { %772 = vmatpush1.bf16.msra.mxu0 %v4998_v49 }
 0x118   :  { %773 = vmatprep.subr.bf16.mxu0 %v5341_v0  ;;  %v363_v31 = vsel %vm355_vm1, %v138_v6, %v4925_v9 }
 0x119   :  { %v4918_v57 = vpop.permute.xlu1 %4917 }
 0x11a   :  { %v4920_v59 = vunpack.i.h.bf16 %v4918_v57  ;;  %v4919_v60 = vunpack.i.l.bf16 %v4918_v57 }
 0x11b   :  { %774 = vmatpush1.bf16.msra.mxu0 %v4999_v52 }
 0x11c   :  { %v5723_v27 = vpack.c.bf16 %v4920_v59, %v4919_v60  ;;  %v375_v1 = vsel %vm370_vm2, %v360_v62, %v4919_v60  ;;  %v376_v23 = vsel %vm370_vm2, %v361_v63, %v4920_v59  ;;  %775 = vmatprep.subr.bf16.mxu0 %v5341_v0  ;;  %v366_v59 = vsel %vm355_vm1, %v141_v53, %v4944_v51 }
 0x11d   :  { %v109_v2 = vpop.permute.xlu1 %108  ;;  %v5728_v3 = vpack.c.bf16 %v376_v23, %v375_v1  ;;  %v4954_v1 = vunpack.i.l.bf16 %v4953_v55 }
 0x11e   :  { %4180 = vmatprep.mubr.msk.bf16.mxu0 %vm626_vm3, %v5723_v27  ;;  %v140_v26 = vmul.f32 %v109_v2, %v5520_v35 }
 0x11f   :  { %711 = vmatmul.mubr.bf16.gmra.mrb[8].mxu0 %v5728_v3  ;;  %v368_v7 = vsel %vm355_vm1, %v143_v5, %v4954_v1 }
 0x120   :  { %776 = vmatpush1.bf16.msra.mxu0 %v5000_v61  ;;  %v365_v35 = vsel %vm355_vm1, %v140_v26, %v4935_v34  ;;  %v5034_v26 = vld [vmem:[%s7219_s5 + $0xa0] ss:$8 sps:$4 sm:$0xff]   ;;  %v5042_v34 = vld [vmem:[%s7219_s5 + $0xc4] ss:$8 sps:$4 sm:$0xff]  }
 0x121   :  { %v4928_v10 = vpop.permute.xlu1 %4927  ;;  %777 = vmatprep.subr.bf16.mxu0 %v5341_v0 }
 0x122   :  { %v4930_v11 = vunpack.i.h.bf16 %v4928_v10  ;;  %v4929_v12 = vunpack.i.l.bf16 %v4928_v10 }
 0x124   :  { %v5747_v43 = vpack.c.bf16 %v4930_v11, %v4929_v12  ;;  %v377_v28 = vsel %vm370_vm2, %v362_v15, %v4929_v12  ;;  %v378_v16 = vsel %vm370_vm2, %v363_v31, %v4930_v11  ;;  %778 = vmatpush1.bf16.msra.mxu0 %v5001_v4  ;;  %v5009_v11 = vld [vmem:[%s7219_s5 + $0x14] ss:$8 sps:$4 sm:$0xff]   ;;  %v5007_v12 = vld [vmem:[%s7219_s5 + $0x10] ss:$8 sps:$4 sm:$0xff]   ;;  %v5018_v15 = vld [vmem:[%s7219_s5 + $0x44] ss:$8 sps:$4 sm:$0xff]  }
 0x125   :  { %v119_v17 = vpop.permute.xlu1 %118  ;;  %v5751_v21 = vpack.c.bf16 %v378_v16, %v377_v28  ;;  %779 = vmatprep.subr.bf16.mxu0 %v5341_v0  ;;  %v5016_v31 = vld [vmem:[%s7219_s5 + $0x40] ss:$8 sps:$4 sm:$0xff]   ;;  %v5030_v16 = vld [vmem:[%s7219_s5 + $0x84] ss:$8 sps:$4 sm:$0xff]  }
 0x126   :  { %4181 = vmatprep.mubr.msk.bf16.mxu0 %vm626_vm3, %v5747_v43  ;;  %v142_v52 = vmul.f32 %v119_v17, %v5536_v39  ;;  %v4955_v39 = vunpack.i.h.bf16 %v4953_v55  ;;  %v5022_v28 = vld [vmem:[%s7219_s5 + $0x60] ss:$8 sps:$4 sm:$0xff]  }
 0x127   :  { %721 = vmatmul.mubr.bf16.gmra.mrb[12].mxu0 %v5751_v21  ;;  %v5028_v17 = vld [vmem:[%s7219_s5 + $0x80] ss:$8 sps:$4 sm:$0xff]  }
 0x128   :  { %780 = vmatpush1.bf16.msra.mxu0 %v5002_v14  ;;  %v367_v60 = vsel %vm355_vm1, %v142_v52, %v4945_v50  ;;  %v5010_v14 = vld [vmem:[%s7219_s5 + $0x20] ss:$8 sps:$4 sm:$0xff]  }
 0x129   :  { %v4938_v37 = vpop.permute.xlu1 %4937  ;;  %781 = vmatprep.subr.bf16.mxu0 %v5341_v0 }
 0x12a   :  { %v4940_v22 = vunpack.i.h.bf16 %v4938_v37  ;;  %v4939_v38 = vunpack.i.l.bf16 %v4938_v37  ;;  %v5040_v37 = vld [vmem:[%s7219_s5 + $0xc0] ss:$8 sps:$4 sm:$0xff]  }
 0x12c   :  { %v5766_v46 = vpack.c.bf16 %v4940_v22, %v4939_v38  ;;  %v379_v48 = vsel %vm370_vm2, %v364_v41, %v4939_v38  ;;  %v380_v49 = vsel %vm370_vm2, %v365_v35, %v4940_v22  ;;  %782 = vmatpush1.bf16.msra.mxu0 %v656_v20  ;;  %v5045_v20 = vld [vmem:[%s7219_s5 + $0xd4] ss:$8 sps:$4 sm:$0xff]   ;;  %v5043_v22 = vld [vmem:[%s7219_s5 + $0xd0] ss:$8 sps:$4 sm:$0xff]   ;;  %v5048_v38 = vld [vmem:[%s7219_s5 + $0xe4] ss:$8 sps:$4 sm:$0xff]  }
 0x12d   :  { %v129_v32 = vpop.permute.xlu1 %128  ;;  %v5770_v47 = vpack.c.bf16 %v380_v49, %v379_v48  ;;  %1968 = vmatprep.subr.bf16.mxu0 %v5006_v29  ;;  %v5039_v29 = vld [vmem:[%s7219_s5 + $0xb4] ss:$8 sps:$4 sm:$0xff]   ;;  %v5046_v41 = vld [vmem:[%s7219_s5 + $0xe0] ss:$8 sps:$4 sm:$0xff]   ;;  %v443_v48 = vlaneseq }
 0x12e   :  { %4182 = vmatprep.mubr.msk.bf16.mxu0 %vm626_vm3, %v5766_v46  ;;  %v144_v23 = vmul.f32 %v129_v32, %v5548_v42  ;;  %v5051_v35 = vld [vmem:[%s7219_s5 + $0xf4] ss:$8 sps:$4 sm:$0xff]  }
 0x12f   :  { %731 = vmatmul.mubr.bf16.gmra.mrb[16].mxu0 %v5770_v47  ;;  %v5915_v49 = vshrl.u32 %v443_v48, 7 }
 0x130   :  { %v369_v8 = vsel %vm355_vm1, %v144_v23, %v4955_v39 }
 0x131   :  { %v4948_v54 = vpop.permute.xlu1 %4947  ;;  %v445_v32 = vsub.s32 0, %v5915_v49  ;;  %v449_v50 = vsub.s32 1, %v5915_v49 }
 0x132   :  { %v4950_v56 = vunpack.i.h.bf16 %v4948_v54  ;;  %v4949_v57 = vunpack.i.l.bf16 %v4948_v54 }
 0x134   :  { %v5780_v61 = vpack.c.bf16 %v4950_v56, %v4949_v57  ;;  %v381_v62 = vsel %vm370_vm2, %v366_v59, %v4949_v57  ;;  %v382_v63 = vsel %vm370_vm2, %v367_v60, %v4950_v56 }
 0x135   :  { %v4958_v2 = vpop.permute.xlu1 %4957  ;;  %v5785_v36 = vpack.c.bf16 %v382_v63, %v381_v62 }
 0x136   :  { %v4960_v58 = vunpack.i.h.bf16 %v4958_v2  ;;  %v4959_v4 = vunpack.i.l.bf16 %v4958_v2  ;;  %4183 = vmatprep.mubr.msk.bf16.mxu0 %vm626_vm3, %v5780_v61 }
 0x137   :  { %741 = vmatmul.mubr.bf16.gmra.mrb[20].mxu0 %v5785_v36 }
 0x138   :  { %v398_v6 = vpack.c.bf16 %v4960_v58, %v4959_v4  ;;  %v383_v42 = vsel %vm370_vm2, %v368_v7, %v4959_v4  ;;  %v384_v9 = vsel %vm370_vm2, %v369_v8, %v4960_v58  ;;  %v5052_v58 = vld [vmem:[%s7219_s5 + $0x100] ss:$8 sps:$4 sm:$0xff]  }
 0x139   :  { %v5796_v10 = vpack.c.bf16 %v384_v9, %v383_v42 }
 0x13a   :  { %4184 = vmatprep.mubr.msk.bf16.mxu0 %vm626_vm3, %v398_v6 }
 0x13f   :  { %751 = vmatmul.mubr.bf16.gmra.mrb[24].mxu0 %v5796_v10 }
 0x140   :  { %4185 = vmatprep.mubr.msk.bf16.mxu0 %vm626_vm3, %v5665_v13  ;;  %v5012_v13 = vld [vmem:[%s7219_s5 + $0x24] ss:$8 sps:$4 sm:$0xff]  }
 0x147   :  { %794 = vmatmul.mubr.bf16.vlgmr.msra.gmra.mrb[28].mxu0 %v5672_v18  ;;  %v5015_v18 = vld [vmem:[%s7219_s5 + $0x34] ss:$8 sps:$4 sm:$0xff]  }
 0x148   :  { %4186 = vmatprep.mubr.msk.bf16.mxu0 %vm626_vm3, %v5679_v30  ;;  %1969 = vmatpush1.bf16.msra.mxu0 %v5004_v40  ;;  %v5013_v30 = vld [vmem:[%s7219_s5 + $0x30] ss:$8 sps:$4 sm:$0xff]  }
 0x149   :  { %1970 = vmatprep.subr.bf16.mxu0 %v5009_v11  ;;  %v5055_v40 = vld [vmem:[%s7219_s5 + $0x110] ss:$8 sps:$4 sm:$0xff]  }
 0x14c   :  { %1971 = vmatpush1.bf16.msra.mxu0 %v5007_v12 }
 0x14d   :  { %1972 = vmatprep.subr.bf16.mxu0 %v5012_v13  ;;  %v5060_v13 = vld [vmem:[%s7219_s5 + $0x124] ss:$8 sps:$4 sm:$0xff]  }
 0x14f   :  { %802 = vmatmul.mubr.bf16.gmra.mrb[32].mxu0 %v5694_v44  ;;  %v5021_v44 = vld [vmem:[%s7219_s5 + $0x54] ss:$8 sps:$4 sm:$0xff]  }
 0x150   :  { %4187 = vmatprep.mubr.msk.bf16.mxu0 %vm626_vm3, %v5723_v27  ;;  %1973 = vmatpush1.bf16.msra.mxu0 %v5010_v14  ;;  %v5019_v27 = vld [vmem:[%s7219_s5 + $0x50] ss:$8 sps:$4 sm:$0xff]  }
 0x151   :  { %1974 = vmatprep.subr.bf16.mxu0 %v5015_v18 }
 0x154   :  { %1975 = vmatpush1.bf16.msra.mxu0 %v5013_v30 }
 0x155   :  { %1976 = vmatprep.subr.bf16.mxu0 %v5018_v15 }
 0x157   :  { %810 = vmatmul.mubr.bf16.gmra.mrb[36].mxu0 %v5728_v3  ;;  %v5027_v3 = vld [vmem:[%s7219_s5 + $0x74] ss:$8 sps:$4 sm:$0xff]  }
 0x158   :  { %4188 = vmatprep.mubr.msk.bf16.mxu0 %vm626_vm3, %v5747_v43  ;;  %1977 = vmatpush1.bf16.msra.mxu0 %v5016_v31  ;;  %v5025_v43 = vld [vmem:[%s7219_s5 + $0x70] ss:$8 sps:$4 sm:$0xff]   ;;  %v5058_v31 = vld [vmem:[%s7219_s5 + $0x120] ss:$8 sps:$4 sm:$0xff]  }
 0x159   :  { %1978 = vmatprep.subr.bf16.mxu0 %v5021_v44 }
 0x15c   :  { %1979 = vmatpush1.bf16.msra.mxu0 %v5019_v27 }
 0x15d   :  { %1980 = vmatprep.subr.bf16.mxu0 %v5024_v19  ;;  %v5063_v19 = vld [vmem:[%s7219_s5 + $0x134] ss:$8 sps:$4 sm:$0xff]  }
 0x15f   :  { %818 = vmatmul.mubr.bf16.gmra.mrb[40].mxu0 %v5751_v21  ;;  %v5033_v21 = vld [vmem:[%s7219_s5 + $0x94] ss:$8 sps:$4 sm:$0xff]  }
 0x160   :  { %4189 = vmatprep.mubr.msk.bf16.mxu0 %vm626_vm3, %v5766_v46  ;;  %1981 = vmatpush1.bf16.msra.mxu0 %v5022_v28  ;;  %v5054_v46 = vld [vmem:[%s7219_s5 + $0x104] ss:$8 sps:$4 sm:$0xff]  }
 0x161   :  { %1982 = vmatprep.subr.bf16.mxu0 %v5027_v3 }
 0x164   :  { %1983 = vmatpush1.bf16.msra.mxu0 %v5025_v43 }
 0x165   :  { %1984 = vmatprep.subr.bf16.mxu0 %v5030_v16 }
 0x167   :  { %826 = vmatmul.mubr.bf16.gmra.mrb[44].mxu0 %v5770_v47  ;;  %v5921_v47 = vld [vmem:[%s7220_s4] sm:$0x7] }
 0x168   :  { %4190 = vmatprep.mubr.msk.bf16.mxu0 %vm626_vm3, %v5780_v61  ;;  %1985 = vmatpush1.bf16.msra.mxu0 %v5028_v17  ;;  %v5927_v51 = vrot.slane %v5921_v47, %v445_v32  ;;  %v5932_v52 = vrot.slane %v5921_v47, %v449_v50  ;;  %v5061_v17 = vld [vmem:[%s7219_s5 + $0x130] ss:$8 sps:$4 sm:$0xff]  }
 0x169   :  { %1986 = vmatprep.subr.bf16.mxu0 %v5033_v21  ;;  %v5066_v21 = vld [vmem:[%s7219_s5 + $0x144] ss:$8 sps:$4 sm:$0xff]  }
 0x16c   :  { %1987 = vmatpush1.bf16.msra.mxu0 %v5031_v24  ;;  %v5064_v24 = vld [vmem:[%s7219_s5 + $0x140] ss:$8 sps:$4 sm:$0xff]  }
 0x16d   :  { %1988 = vmatprep.subr.bf16.mxu0 %v5036_v25  ;;  %v5069_v25 = vld [vmem:[%s7219_s5 + $0x154] ss:$8 sps:$4 sm:$0xff]  }
 0x16f   :  { %834 = vmatmul.mubr.bf16.gmra.mrb[48].mxu0 %v5785_v36 }
 0x170   :  { %4191 = vmatprep.mubr.msk.bf16.mxu0 %vm626_vm3, %v398_v6  ;;  %1989 = vmatpush1.bf16.msra.mxu0 %v5034_v26  ;;  %v5057_v6 = vld [vmem:[%s7219_s5 + $0x114] ss:$8 sps:$4 sm:$0xff]   ;;  %v5067_v26 = vld [vmem:[%s7219_s5 + $0x150] ss:$8 sps:$4 sm:$0xff]  }
 0x171   :  { %1990 = vmatprep.subr.bf16.mxu0 %v5039_v29 }
 0x174   :  { %1991 = vmatpush1.bf16.msra.mxu0 %v5037_v33  ;;  %v5072_v33 = vld [vmem:[%s7219_s5 + $0x164] ss:$8 sps:$4 sm:$0xff]  }
 0x175   :  { %1992 = vmatprep.subr.bf16.mxu0 %v5042_v34 }
 0x177   :  { %842 = vmatmul.mubr.bf16.gmra.mrb[52].mxu0 %v5796_v10 }
 0x178   :  { %1993 = vmatpush1.bf16.msra.mxu0 %v5040_v37 }
 0x179   :  { %1994 = vmatprep.subr.bf16.mxu0 %v5045_v20 }
 0x17c   :  { %1995 = vmatpush1.bf16.msra.mxu0 %v5043_v22 }
 0x17d   :  { %1996 = vmatprep.subr.bf16.mxu0 %v5048_v38 }
 0x180   :  { %1997 = vmatpush1.bf16.msra.mxu0 %v5046_v41 }
 0x181   :  { %1998 = vmatprep.subr.bf16.mxu0 %v5051_v35  ;;  %v5070_v35 = vld [vmem:[%s7219_s5 + $0x160] ss:$8 sps:$4 sm:$0xff]  }
 0x184   :  { %1999 = vmatpush1.bf16.msra.mxu0 %v5049_v45 }
 0x185   :  { %2067 = vmatprep.subr.bf16.mxu0 %v5054_v46  ;;  %v5075_v46 = vld [vmem:[%s7219_s5 + $0x174] ss:$8 sps:$4 sm:$0xff]  }
 0x1d5   :  { %v692_v53 = vpop.f32.mrb[0].mxu0 }
 0x1d6   :  { %v693_v54 = vadd.f32 %v692_v53, %v5927_v51  ;;  %v694_v55 = vpop.f32.mrb[1].mxu0 }
 0x1d7   :  { %v695_v56 = vadd.f32 %v694_v55, %v5932_v52  ;;  %v696_v57 = vpop.f32.mrb[2].mxu0 }
 0x1d8   :  { %v697_v59 = vadd.f32 %v696_v57, %v5927_v51  ;;  %v698_v60 = vpop.f32.mrb[3].mxu0  ;;  %v850_v62 = vmax.f32 %v693_v54, 0.0 }
 0x1d9   :  { %v699_v61 = vadd.f32 %v698_v60, %v5932_v52  ;;  %v851_v39 = vmax.f32 %v695_v56, 0.0  ;;  %v5073_v60 = vld [vmem:[%s7219_s5 + $0x170] ss:$8 sps:$4 sm:$0xff]  }
 0x1da   :  { %v853_v63 = vmax.f32 %v697_v59, 0.0 }
 0x1db   :  { %v854_v1 = vmax.f32 %v699_v61, 0.0 }
 0x1dc   :  { %v5938_v23 = vpack.c.bf16 %v853_v63, %v850_v62 }
 0x1dd   :  { %v5940_v2 = vpack.c.bf16 %v854_v1, %v851_v39  ;;  %v702_v36 = vpop.f32.mrb[4].mxu0  ;;  %v5078_v39 = vld [vmem:[%s7219_s5 + $0x184] ss:$8 sps:$4 sm:$0xff]  }
 0x1de   :  { %v703_v4 = vadd.f32 %v702_v36, %v5927_v51  ;;  %v704_v5 = vpop.f32.mrb[5].mxu0  ;;  %v935_v44 = vrot.slane %v5938_v23, 4 }
 0x1df   :  { %v705_v7 = vadd.f32 %v704_v5, %v5932_v52  ;;  %v706_v8 = vpop.f32.mrb[6].mxu0  ;;  %2000 = vmatprep.mubr.bf16.mxu0 %v5940_v2  ;;  %v938_v28 = vrot.slane %v5940_v2, 4 }
 0x1e0   :  { %v707_v42 = vadd.f32 %v706_v8, %v5927_v51  ;;  %v708_v9 = vpop.f32.mrb[7].mxu0  ;;  %2001 = vmatmul.mubr.bf16.vlgmr.msra.gmra.mrb[56].mxu0 %v5938_v23  ;;  %v856_v11 = vmax.f32 %v703_v4, 0.0 }
 0x1e1   :  { %v709_v10 = vadd.f32 %v708_v9, %v5932_v52  ;;  %2068 = vmatpush1.bf16.msra.mxu0 %v5052_v58  ;;  %v857_v14 = vmax.f32 %v705_v7, 0.0 }
 0x1e2   :  { %v859_v12 = vmax.f32 %v707_v42, 0.0  ;;  %2069 = vmatprep.subr.bf16.mxu0 %v5057_v6  ;;  %v5076_v42 = vld [vmem:[%s7219_s5 + $0x180] ss:$8 sps:$4 sm:$0xff]  }
 0x1e3   :  { %v860_v18 = vmax.f32 %v709_v10, 0.0 }
 0x1e4   :  { %v5960_v30 = vpack.c.bf16 %v859_v12, %v856_v11 }
 0x1e5   :  { %v5962_v15 = vpack.c.bf16 %v860_v18, %v857_v14  ;;  %2070 = vmatpush1.bf16.msra.mxu0 %v5055_v40  ;;  %v5081_v40 = vld [vmem:[%s7219_s5 + $0x194] ss:$8 sps:$4 sm:$0xff]  }
 0x1e6   :  { %v936_v27 = vrot.slane %v5960_v30, 4  ;;  %2071 = vmatprep.subr.bf16.mxu0 %v5060_v13 }
 0x1e7   :  { %2010 = vmatprep.mubr.bf16.mxu0 %v5962_v15  ;;  %v939_v3 = vrot.slane %v5962_v15, 4 }
 0x1e8   :  { %2011 = vmatmul.mubr.bf16.gmra.mrb[60].mxu0 %v5960_v30  ;;  %v937_v43 = vsel %vm648_vm0, %v935_v44, %v936_v27 }
 0x1e9   :  { %986 = vrot.lane.b32.xlu0 %v937_v43, %s5344_s25  ;;  %v940_v16 = vsel %vm648_vm0, %v938_v28, %v939_v3  ;;  %2072 = vmatpush1.bf16.msra.mxu0 %v5058_v31  ;;  %v5079_v31 = vld [vmem:[%s7219_s5 + $0x190] ss:$8 sps:$4 sm:$0xff]   ;;  %v5084_v43 = vld [vmem:[%s7219_s5 + $0x1a4] ss:$8 sps:$4 sm:$0xff]  }
 0x1ea   :  { %988 = vrot.lane.b32.xlu1 %v940_v16, %s5344_s25  ;;  %2073 = vmatprep.subr.bf16.mxu0 %v5063_v19 }
 0x1ed   :  { %2074 = vmatpush1.bf16.msra.mxu0 %v5061_v17 }
 0x1ee   :  { %2075 = vmatprep.subr.bf16.mxu0 %v5066_v21 }
 0x1f1   :  { %2076 = vmatpush1.bf16.msra.mxu0 %v5064_v24 }
 0x1f2   :  { %v712_v29 = vpop.f32.mrb[8].mxu0  ;;  %2077 = vmatprep.subr.bf16.mxu0 %v5069_v25 }
 0x1f3   :  { %v713_v34 = vadd.f32 %v712_v29, %v5927_v51  ;;  %v714_v37 = vpop.f32.mrb[9].mxu0 }
 0x1f4   :  { %v715_v20 = vadd.f32 %v714_v37, %v5932_v52  ;;  %v716_v22 = vpop.f32.mrb[10].mxu0 }
 0x1f5   :  { %v717_v38 = vadd.f32 %v716_v22, %v5927_v51  ;;  %v718_v41 = vpop.f32.mrb[11].mxu0  ;;  %2078 = vmatpush1.bf16.msra.mxu0 %v5067_v26  ;;  %v862_v48 = vmax.f32 %v713_v34, 0.0  ;;  %v5082_v34 = vld [vmem:[%s7219_s5 + $0x1a0] ss:$8 sps:$4 sm:$0xff]   ;;  %v5087_v22 = vld [vmem:[%s7219_s5 + $0x1b4] ss:$8 sps:$4 sm:$0xff]  }
 0x1f6   :  { %v719_v45 = vadd.f32 %v718_v41, %v5932_v52  ;;  %2079 = vmatprep.subr.bf16.mxu0 %v5072_v33  ;;  %v863_v54 = vmax.f32 %v715_v20, 0.0 }
 0x1f7   :  { %v865_v53 = vmax.f32 %v717_v38, 0.0 }
 0x1f8   :  { %v866_v55 = vmax.f32 %v719_v45, 0.0 }
 0x1f9   :  { %v6012_v56 = vpack.c.bf16 %v865_v53, %v862_v48  ;;  %2080 = vmatpush1.bf16.msra.mxu0 %v5070_v35  ;;  %v5085_v48 = vld [vmem:[%s7219_s5 + $0x1b0] ss:$8 sps:$4 sm:$0xff]  }
 0x1fa   :  { %v6014_v57 = vpack.c.bf16 %v866_v55, %v863_v54  ;;  %v722_v59 = vpop.f32.mrb[12].mxu0  ;;  %2081 = vmatprep.subr.bf16.mxu0 %v5075_v46 }
 0x1fb   :  { %v723_v61 = vadd.f32 %v722_v59, %v5927_v51  ;;  %v724_v62 = vpop.f32.mrb[13].mxu0  ;;  %v944_v63 = vrot.slane %v6012_v56, 4  ;;  %v5090_v59 = vld [vmem:[%s7219_s5 + $0x1c4] ss:$8 sps:$4 sm:$0xff]  }
 0x1fc   :  { %v725_v1 = vadd.f32 %v724_v62, %v5932_v52  ;;  %v726_v36 = vpop.f32.mrb[14].mxu0  ;;  %2020 = vmatprep.mubr.bf16.mxu0 %v6014_v57  ;;  %v946_v58 = vrot.slane %v6014_v57, 4 }
 0x1fd   :  { %v727_v4 = vadd.f32 %v726_v36, %v5927_v51  ;;  %v728_v5 = vpop.f32.mrb[15].mxu0  ;;  %2021 = vmatmul.mubr.bf16.gmra.mrb[64].mxu0 %v6012_v56  ;;  %v945_v6 = vsel %vm648_vm0, %v936_v27, %v944_v63  ;;  %v868_v9 = vmax.f32 %v723_v61, 0.0 }
 0x1fe   :  { %v729_v7 = vadd.f32 %v728_v5, %v5932_v52  ;;  %992 = vrot.lane.b32.xlu0 %v945_v6, %s5344_s25  ;;  %v947_v8 = vsel %vm648_vm0, %v939_v3, %v946_v58  ;;  %2082 = vmatpush1.bf16.msra.mxu0 %v5073_v60  ;;  %v869_v11 = vmax.f32 %v725_v1, 0.0 }
 0x1ff   :  { %v871_v10 = vmax.f32 %v727_v4, 0.0  ;;  %994 = vrot.lane.b32.xlu1 %v947_v8, %s5344_s25  ;;  %2083 = vmatprep.subr.bf16.mxu0 %v5078_v39  ;;  %v5088_v4 = vld [vmem:[%s7219_s5 + $0x1c0] ss:$8 sps:$4 sm:$0xff]  }
 0x200   :  { %v872_v12 = vmax.f32 %v729_v7, 0.0  ;;  %v5093_v7 = vld [vmem:[%s7219_s5 + $0x1d4] ss:$8 sps:$4 sm:$0xff]  }
 0x201   :  { %v6040_v13 = vpack.c.bf16 %v871_v10, %v868_v9 }
 0x202   :  { %v6042_v14 = vpack.c.bf16 %v872_v12, %v869_v11  ;;  %v732_v18 = vpop.f32.mrb[16].mxu0  ;;  %2084 = vmatpush1.bf16.msra.mxu0 %v5076_v42  ;;  %v5091_v11 = vld [vmem:[%s7219_s5 + $0x1d0] ss:$8 sps:$4 sm:$0xff]  }
 0x203   :  { %v733_v27 = vadd.f32 %v732_v18, %v5927_v51  ;;  %v734_v19 = vpop.f32.mrb[17].mxu0  ;;  %v950_v3 = vrot.slane %v6040_v13, 4  ;;  %2085 = vmatprep.subr.bf16.mxu0 %v5081_v40 }
 0x204   :  { %v735_v16 = vadd.f32 %v734_v19, %v5932_v52  ;;  %v736_v17 = vpop.f32.mrb[18].mxu0  ;;  %2030 = vmatprep.mubr.bf16.mxu0 %v6042_v14  ;;  %v952_v21 = vrot.slane %v6042_v14, 4  ;;  %v5096_v19 = vld [vmem:[%s7219_s5 + $0x1e4] ss:$8 sps:$4 sm:$0xff]  }
 0x205   :  { %v737_v24 = vadd.f32 %v736_v17, %v5927_v51  ;;  %v738_v25 = vpop.f32.mrb[19].mxu0  ;;  %2031 = vmatmul.mubr.bf16.gmra.mrb[68].mxu0 %v6040_v13  ;;  %v951_v26 = vsel %vm648_vm0, %v944_v63, %v950_v3  ;;  %v874_v37 = vmax.f32 %v733_v27, 0.0  ;;  %v453_v27 = vsub.s32 2, %v5915_v49 }
 0x206   :  { %v739_v29 = vadd.f32 %v738_v25, %v5932_v52  ;;  %998 = vrot.lane.b32.xlu0 %v951_v26, %s5344_s25  ;;  %v953_v33 = vsel %vm648_vm0, %v946_v58, %v952_v21  ;;  %2086 = vmatpush1.bf16.msra.mxu0 %v5079_v31  ;;  %v875_v38 = vmax.f32 %v735_v16, 0.0 }
 0x207   :  { %v877_v20 = vmax.f32 %v737_v24, 0.0  ;;  %1000 = vrot.lane.b32.xlu1 %v953_v33, %s5344_s25  ;;  %2087 = vmatprep.subr.bf16.mxu0 %v5084_v43 }
 0x208   :  { %v878_v41 = vmax.f32 %v739_v29, 0.0  ;;  %v5094_v29 = vld [vmem:[%s7219_s5 + $0x1e0] ss:$8 sps:$4 sm:$0xff]  }
 0x209   :  { %v6068_v35 = vpack.c.bf16 %v877_v20, %v874_v37 }
 0x20a   :  { %v6070_v45 = vpack.c.bf16 %v878_v41, %v875_v38  ;;  %v742_v46 = vpop.f32.mrb[20].mxu0  ;;  %2088 = vmatpush1.bf16.msra.mxu0 %v5082_v34 }
 0x20b   :  { %v743_v53 = vadd.f32 %v742_v46, %v5927_v51  ;;  %v744_v54 = vpop.f32.mrb[21].mxu0  ;;  %v956_v55 = vrot.slane %v6068_v35, 4  ;;  %2089 = vmatprep.subr.bf16.mxu0 %v5087_v22  ;;  %v5097_v46 = vld [vmem:[%s7219_s5 + $0x1f0] ss:$8 sps:$4 sm:$0xff]  }
 0x20c   :  { %v745_v60 = vadd.f32 %v744_v54, %v5932_v52  ;;  %v746_v61 = vpop.f32.mrb[22].mxu0  ;;  %2040 = vmatprep.mubr.bf16.mxu0 %v6070_v45  ;;  %v958_v62 = vrot.slane %v6070_v45, 4  ;;  %v5102_v54 = vld [vmem:[%s7219_s5 + $0x204] ss:$8 sps:$4 sm:$0xff]  }
 0x20d   :  { %v747_v63 = vadd.f32 %v746_v61, %v5927_v51  ;;  %v748_v39 = vpop.f32.mrb[23].mxu0  ;;  %2041 = vmatmul.mubr.bf16.gmra.mrb[72].mxu0 %v6068_v35  ;;  %v957_v1 = vsel %vm648_vm0, %v950_v3, %v956_v55  ;;  %v880_v5 = vmax.f32 %v743_v53, 0.0 }
 0x20e   :  { %v749_v36 = vadd.f32 %v748_v39, %v5932_v52  ;;  %1004 = vrot.lane.b32.xlu0 %v957_v1, %s5344_s25  ;;  %v959_v58 = vsel %vm648_vm0, %v952_v21, %v958_v62  ;;  %2090 = vmatpush1.bf16.msra.mxu0 %v5085_v48  ;;  %v881_v8 = vmax.f32 %v745_v60, 0.0 }
 0x20f   :  { %v883_v6 = vmax.f32 %v747_v63, 0.0  ;;  %1006 = vrot.lane.b32.xlu1 %v959_v58, %s5344_s25  ;;  %2091 = vmatprep.subr.bf16.mxu0 %v5090_v59 }
 0x210   :  { %v884_v42 = vmax.f32 %v749_v36, 0.0 }
 0x211   :  { %v6096_v9 = vpack.c.bf16 %v883_v6, %v880_v5 }
 0x212   :  { %v6098_v10 = vpack.c.bf16 %v884_v42, %v881_v8  ;;  %v752_v40 = vpop.f32.mrb[24].mxu0  ;;  %2092 = vmatpush1.bf16.msra.mxu0 %v5088_v4 }
 0x213   :  { %v753_v12 = vadd.f32 %v752_v40, %v5927_v51  ;;  %v754_v18 = vpop.f32.mrb[25].mxu0  ;;  %v962_v31 = vrot.slane %v6096_v9, 4  ;;  %2093 = vmatprep.subr.bf16.mxu0 %v5093_v7 }
 0x214   :  { %v755_v3 = vadd.f32 %v754_v18, %v5932_v52  ;;  %v756_v43 = vpop.f32.mrb[26].mxu0  ;;  %2050 = vmatprep.mubr.bf16.mxu0 %v6098_v10  ;;  %v964_v16 = vrot.slane %v6098_v10, 4 }
 0x215   :  { %v757_v17 = vadd.f32 %v756_v43, %v5927_v51  ;;  %v758_v21 = vpop.f32.mrb[27].mxu0  ;;  %2051 = vmatmul.mubr.bf16.gmra.mrb[76].mxu0 %v6096_v9  ;;  %v963_v24 = vsel %vm648_vm0, %v956_v55, %v962_v31  ;;  %v886_v33 = vmax.f32 %v753_v12, 0.0  ;;  %v6123_v51 = vrot.slane %v5921_v47, %v453_v27 }
 0x216   :  { %v759_v25 = vadd.f32 %v758_v21, %v5932_v52  ;;  %1010 = vrot.lane.b32.xlu0 %v963_v24, %s5344_s25  ;;  %v965_v26 = vsel %vm648_vm0, %v958_v62, %v964_v16  ;;  %2094 = vmatpush1.bf16.msra.mxu0 %v5091_v11  ;;  %v5099_v52 = vld [vmem:[%s7219_s5 + $0x1f4] ss:$8 sps:$4 sm:$0xff]   ;;  %v887_v37 = vmax.f32 %v755_v3, 0.0 }
 0x217   :  { %v889_v34 = vmax.f32 %v757_v17, 0.0  ;;  %1012 = vrot.lane.b32.xlu1 %v965_v26, %s5344_s25  ;;  %2095 = vmatprep.subr.bf16.mxu0 %v5096_v19 }
 0x218   :  { %v890_v20 = vmax.f32 %v759_v25, 0.0 }
 0x219   :  { %v6128_v22 = vpack.c.bf16 %v889_v34, %v886_v33 }
 0x21a   :  { %v6130_v38 = vpack.c.bf16 %v890_v20, %v887_v37  ;;  %v795_v41 = vpop.f32.mrb[28].mxu0  ;;  %2096 = vmatpush1.bf16.msra.mxu0 %v5094_v29 }
 0x21b   :  { %v796_v47 = vadd.f32 %v795_v41, %v6123_v51  ;;  %v797_v48 = vpop.f32.mrb[29].mxu0  ;;  %v968_v53 = vrot.slane %v6128_v22, 4  ;;  %2097 = vmatprep.subr.bf16.mxu0 %v5099_v52 }
 0x21c   :  { %v798_v55 = vpop.f32.mrb[30].mxu0  ;;  %2060 = vmatprep.mubr.bf16.mxu0 %v6130_v38  ;;  %v970_v59 = vrot.slane %v6130_v38, 4 }
 0x21d   :  { %v799_v60 = vadd.f32 %v798_v55, %v6123_v51  ;;  %v800_v61 = vpop.f32.mrb[31].mxu0  ;;  %2061 = vmatmul.mubr.bf16.gmra.mrb[80].mxu0 %v6128_v22  ;;  %v969_v62 = vsel %vm648_vm0, %v962_v31, %v968_v53  ;;  %v852_v39 = vmax.f32 %v796_v47, 0.0  ;;  %v976_v58 = vsel %vm648_vm0, %v968_v53, %v935_v44 }
 0x21e   :  { %1016 = vrot.lane.b32.xlu0 %v969_v62, %s5344_s25  ;;  %v971_v63 = vsel %vm648_vm0, %v964_v16, %v970_v59  ;;  %2098 = vmatpush1.bf16.msra.mxu0 %v5097_v46  ;;  %v979_v5 = vsel %vm648_vm0, %v970_v59, %v938_v28 }
 0x21f   :  { %v855_v1 = vmax.f32 %v799_v60, 0.0  ;;  %1018 = vrot.lane.b32.xlu1 %v971_v63, %s5344_s25  ;;  %2166 = vmatprep.subr.bf16.mxu0 %v5102_v54 }
 0x221   :  { %v6148_v36 = vpack.c.bf16 %v855_v1, %v852_v39 }
 0x222   :  { %v803_v4 = vpop.f32.mrb[32].mxu0  ;;  %1022 = vrot.lane.b32.xlu0 %v976_v58, %s5344_s25 }
 0x223   :  { %v804_v6 = vadd.f32 %v803_v4, %v6123_v51  ;;  %v805_v7 = vpop.f32.mrb[33].mxu0  ;;  %1024 = vrot.lane.b32.xlu1 %v979_v5, %s5344_s25  ;;  %v941_v27 = vrot.slane %v6148_v36, 4 }
 0x224   :  { %v806_v8 = vpop.f32.mrb[34].mxu0 }
 0x225   :  { %v807_v42 = vadd.f32 %v806_v8, %v6123_v51  ;;  %v808_v40 = vpop.f32.mrb[35].mxu0  ;;  %v858_v11 = vmax.f32 %v804_v6, 0.0 }
 0x227   :  { %v861_v12 = vmax.f32 %v807_v42, 0.0  ;;  %1057 = vrot.lane.b32.xlu1 %v5960_v30, %s5345_s27 }
 0x229   :  { %v6162_v44 = vpack.c.bf16 %v861_v12, %v858_v11 }
 0x22a   :  { %v811_v18 = vpop.f32.mrb[36].mxu0 }
 0x22b   :  { %v812_v28 = vadd.f32 %v811_v18, %v6123_v51  ;;  %v813_v31 = vpop.f32.mrb[37].mxu0  ;;  %1063 = vrot.lane.b32.xlu1 %v6012_v56, %s5345_s27  ;;  %v942_v19 = vrot.slane %v6162_v44, 4 }
 0x22c   :  { %v814_v3 = vpop.f32.mrb[38].mxu0 }
 0x22d   :  { %v815_v43 = vadd.f32 %v814_v3, %v6123_v51  ;;  %v816_v16 = vpop.f32.mrb[39].mxu0  ;;  %v943_v30 = vsel %vm648_vm0, %v941_v27, %v942_v19  ;;  %v864_v17 = vmax.f32 %v812_v28, 0.0 }
 0x22e   :  { %990 = vrot.lane.b32.xlu0 %v943_v30, %s5344_s25 }
 0x22f   :  { %v867_v21 = vmax.f32 %v815_v43, 0.0  ;;  %1069 = vrot.lane.b32.xlu1 %v6040_v13, %s5345_s27 }
 0x231   :  { %v6176_v56 = vpack.c.bf16 %v867_v21, %v864_v17 }
 0x232   :  { %v819_v24 = vpop.f32.mrb[40].mxu0 }
 0x233   :  { %v820_v25 = vadd.f32 %v819_v24, %v6123_v51  ;;  %v821_v26 = vpop.f32.mrb[41].mxu0  ;;  %1075 = vrot.lane.b32.xlu1 %v6068_v35, %s5345_s27  ;;  %v948_v29 = vrot.slane %v6176_v56, 4  ;;  %v5100_v24 = vld [vmem:[%s7219_s5 + $0x200] ss:$8 sps:$4 sm:$0xff]  }
 0x234   :  { %v822_v33 = vpop.f32.mrb[42].mxu0 }
 0x235   :  { %v823_v34 = vadd.f32 %v822_v33, %v6123_v51  ;;  %v824_v52 = vpop.f32.mrb[43].mxu0  ;;  %v949_v37 = vsel %vm648_vm0, %v942_v19, %v948_v29  ;;  %v870_v13 = vmax.f32 %v820_v25, 0.0  ;;  %v5108_v33 = vld [vmem:[%s7219_s5 + $0x224] ss:$8 sps:$4 sm:$0xff]  }
 0x236   :  { %996 = vrot.lane.b32.xlu0 %v949_v37, %s5344_s25  ;;  %v5112_v52 = vld [vmem:[%s7219_s5 + $0x240] ss:$8 sps:$4 sm:$0xff]  }
 0x237   :  { %v873_v20 = vmax.f32 %v823_v34, 0.0  ;;  %1081 = vrot.lane.b32.xlu1 %v6096_v9, %s5345_s27  ;;  %v5109_v34 = vld [vmem:[%s7219_s5 + $0x230] ss:$8 sps:$4 sm:$0xff]  }
 0x239   :  { %v6187_v41 = vpack.c.bf16 %v873_v20, %v870_v13 }
 0x23a   :  { %v827_v46 = vpop.f32.mrb[44].mxu0 }
 0x23b   :  { %v828_v35 = vadd.f32 %v827_v46, %v6123_v51  ;;  %v829_v47 = vpop.f32.mrb[45].mxu0  ;;  %1087 = vrot.lane.b32.xlu1 %v6128_v22, %s5345_s27  ;;  %v954_v48 = vrot.slane %v6187_v41, 4  ;;  %v5120_v46 = vld [vmem:[%s7219_s5 + $0x264] ss:$8 sps:$4 sm:$0xff]  }
 0x23c   :  { %v830_v53 = vpop.f32.mrb[46].mxu0 }
 0x23d   :  { %v831_v54 = vadd.f32 %v830_v53, %v6123_v51  ;;  %v832_v55 = vpop.f32.mrb[47].mxu0  ;;  %v955_v59 = vsel %vm648_vm0, %v948_v29, %v954_v48  ;;  %v876_v9 = vmax.f32 %v828_v35, 0.0  ;;  %v5103_v29 = vld [vmem:[%s7219_s5 + $0x210] ss:$8 sps:$4 sm:$0xff]   ;;  %v5118_v35 = vld [vmem:[%s7219_s5 + $0x260] ss:$8 sps:$4 sm:$0xff]  }
 0x23e   :  { %1002 = vrot.lane.b32.xlu0 %v955_v59, %s5344_s25  ;;  %v5124_v55 = vld [vmem:[%s7219_s5 + $0x280] ss:$8 sps:$4 sm:$0xff]   ;;  %v5129_v59 = vld [vmem:[%s7219_s5 + $0x294] ss:$8 sps:$4 sm:$0xff]  }
 0x23f   :  { %v879_v60 = vmax.f32 %v831_v54, 0.0  ;;  %1093 = vrot.lane.b32.xlu1 %v5938_v23, %s5345_s27 }
 0x241   :  { %v6198_v61 = vpack.c.bf16 %v879_v60, %v876_v9 }
 0x242   :  { %v835_v62 = vpop.f32.mrb[48].mxu0 }
 0x243   :  { %v836_v22 = vadd.f32 %v835_v62, %v6123_v51  ;;  %v837_v63 = vpop.f32.mrb[49].mxu0  ;;  %1061 = vrot.lane.b32.xlu1 %v6162_v44, %s5345_s27  ;;  %v960_v39 = vrot.slane %v6198_v61, 4  ;;  %v5127_v62 = vld [vmem:[%s7219_s5 + $0x290] ss:$8 sps:$4 sm:$0xff]  }
 0x244   :  { %v838_v1 = vpop.f32.mrb[50].mxu0 }
 0x245   :  { %v839_v58 = vadd.f32 %v838_v1, %v6123_v51  ;;  %v840_v4 = vpop.f32.mrb[51].mxu0  ;;  %v961_v5 = vsel %vm648_vm0, %v954_v48, %v960_v39  ;;  %v882_v23 = vmax.f32 %v836_v22, 0.0  ;;  %v5132_v22 = vld [vmem:[%s7219_s5 + $0x2a4] ss:$8 sps:$4 sm:$0xff]   ;;  %v5135_v1 = vld [vmem:[%s7219_s5 + $0x2b4] ss:$8 sps:$4 sm:$0xff]  }
 0x246   :  { %1008 = vrot.lane.b32.xlu0 %v961_v5, %s5344_s25  ;;  %v5133_v5 = vld [vmem:[%s7219_s5 + $0x2b0] ss:$8 sps:$4 sm:$0xff]  }
 0x247   :  { %v885_v6 = vmax.f32 %v839_v58, 0.0  ;;  %1067 = vrot.lane.b32.xlu1 %v6176_v56, %s5345_s27 }
 0x249   :  { %v6209_v7 = vpack.c.bf16 %v885_v6, %v882_v23  ;;  %v5138_v23 = vld [vmem:[%s7219_s5 + $0x2c4] ss:$8 sps:$4 sm:$0xff]  }
 0x24a   :  { %v843_v8 = vpop.f32.mrb[52].mxu0 }
 0x24b   :  { %v844_v42 = vadd.f32 %v843_v8, %v6123_v51  ;;  %v845_v40 = vpop.f32.mrb[53].mxu0  ;;  %1073 = vrot.lane.b32.xlu1 %v6187_v41, %s5345_s27  ;;  %v966_v11 = vrot.slane %v6209_v7, 4  ;;  %v5136_v8 = vld [vmem:[%s7219_s5 + $0x2c0] ss:$8 sps:$4 sm:$0xff]  }
 0x24c   :  { %v846_v12 = vpop.f32.mrb[54].mxu0 }
 0x24d   :  { %v847_v18 = vadd.f32 %v846_v12, %v6123_v51  ;;  %v848_v28 = vpop.f32.mrb[55].mxu0  ;;  %v967_v31 = vsel %vm648_vm0, %v960_v39, %v966_v11  ;;  %v888_v19 = vmax.f32 %v844_v42, 0.0  ;;  %v5130_v39 = vld [vmem:[%s7219_s5 + $0x2a0] ss:$8 sps:$4 sm:$0xff]   ;;  %v5141_v42 = vld [vmem:[%s7219_s5 + $0x2d4] ss:$8 sps:$4 sm:$0xff]  }
 0x24e   :  { %1014 = vrot.lane.b32.xlu0 %v967_v31, %s5344_s25  ;;  %v5139_v12 = vld [vmem:[%s7219_s5 + $0x2d0] ss:$8 sps:$4 sm:$0xff]  }
 0x24f   :  { %v891_v3 = vmax.f32 %v847_v18, 0.0  ;;  %1079 = vrot.lane.b32.xlu1 %v6198_v61, %s5345_s27  ;;  %v5144_v18 = vld [vmem:[%s7219_s5 + $0x2e4] ss:$8 sps:$4 sm:$0xff]  }
 0x251   :  { %v6220_v43 = vpack.c.bf16 %v891_v3, %v888_v19  ;;  %v5142_v3 = vld [vmem:[%s7219_s5 + $0x2e0] ss:$8 sps:$4 sm:$0xff]  }
 0x253   :  { %1085 = vrot.lane.b32.xlu1 %v6209_v7, %s5345_s27  ;;  %v972_v16 = vrot.slane %v6220_v43, 4 }
 0x255   :  { %v973_v30 = vsel %vm648_vm0, %v966_v11, %v972_v16  ;;  %v982_v51 = vsel %vm648_vm0, %v972_v16, %v941_v27  ;;  %v5105_v27 = vld [vmem:[%s7219_s5 + $0x214] ss:$8 sps:$4 sm:$0xff]  }
 0x256   :  { %1020 = vrot.lane.b32.xlu0 %v973_v30, %s5344_s25  ;;  %v5147_v30 = vld [vmem:[%s7219_s5 + $0x2f4] ss:$8 sps:$4 sm:$0xff]  }
 0x257   :  { %1091 = vrot.lane.b32.xlu1 %v6220_v43, %s5345_s27 }
 0x25a   :  { %1026 = vrot.lane.b32.xlu0 %v982_v51, %s5344_s25  ;;  %v5150_v51 = vld [vmem:[%s7219_s5 + $0x304] ss:$8 sps:$4 sm:$0xff]  }
 0x25b   :  { %1097 = vrot.lane.b32.xlu1 %v6148_v36, %s5345_s27  ;;  %v987_v17 = vpop.permute.xlu0 %986 }
 0x25c   :  { %v6235_v21 = vpop.permute.xlu1 %988  ;;  %v1124_v26 = vsel %vm1028_vm4, %v6148_v36, %v987_v17  ;;  %v5111_v36 = vld [vmem:[%s7219_s5 + $0x234] ss:$8 sps:$4 sm:$0xff]  }
 0x25d   :  { %v1029_v25 = vsel %vm1028_vm4, %v987_v17, %v6235_v21 }
 0x25e   :  { %1059 = vrot.lane.b32.xlu0 %v5962_v15, %s5345_s27  ;;  %2099 = vmatprep.mubr.bf16.mxu0 %v1029_v25  ;;  %v5106_v15 = vld [vmem:[%s7219_s5 + $0x220] ss:$8 sps:$4 sm:$0xff]  }
 0x25f   :  { %2100 = vmatmul.mubr.bf16.vlgmr.msra.gmra.mrb[56].mxu0 %v1124_v26  ;;  %v5148_v26 = vld [vmem:[%s7219_s5 + $0x300] ss:$8 sps:$4 sm:$0xff]  }
 0x260   :  { %2167 = vmatpush1.bf16.msra.mxu0 %v5100_v24 }
 0x261   :  { %2168 = vmatprep.subr.bf16.mxu0 %v5105_v27 }
 0x262   :  { %1065 = vrot.lane.b32.xlu0 %v6014_v57, %s5345_s27  ;;  %v5114_v57 = vld [vmem:[%s7219_s5 + $0x244] ss:$8 sps:$4 sm:$0xff]  }
 0x264   :  { %2169 = vmatpush1.bf16.msra.mxu0 %v5103_v29  ;;  %v5153_v29 = vld [vmem:[%s7219_s5 + $0x314] ss:$8 sps:$4 sm:$0xff]  }
 0x265   :  { %2170 = vmatprep.subr.bf16.mxu0 %v5108_v33  ;;  %v5151_v33 = vld [vmem:[%s7219_s5 + $0x310] ss:$8 sps:$4 sm:$0xff]  }
 0x266   :  { %1071 = vrot.lane.b32.xlu0 %v6042_v14, %s5345_s27  ;;  %v5117_v14 = vld [vmem:[%s7219_s5 + $0x254] ss:$8 sps:$4 sm:$0xff]  }
 0x268   :  { %2171 = vmatpush1.bf16.msra.mxu0 %v5106_v15  ;;  %v5156_v15 = vld [vmem:[%s7219_s5 + $0x324] ss:$8 sps:$4 sm:$0xff]  }
 0x269   :  { %2172 = vmatprep.subr.bf16.mxu0 %v5111_v36 }
 0x26a   :  { %1077 = vrot.lane.b32.xlu0 %v6070_v45, %s5345_s27  ;;  %v5115_v45 = vld [vmem:[%s7219_s5 + $0x250] ss:$8 sps:$4 sm:$0xff]  }
 0x26c   :  { %2173 = vmatpush1.bf16.msra.mxu0 %v5109_v34 }
 0x26d   :  { %2174 = vmatprep.subr.bf16.mxu0 %v5114_v57 }
 0x26e   :  { %1083 = vrot.lane.b32.xlu0 %v6098_v10, %s5345_s27 }
 0x270   :  { %v993_v37 = vpop.permute.xlu0 %992  ;;  %2175 = vmatpush1.bf16.msra.mxu0 %v5112_v52  ;;  %v5159_v52 = vld [vmem:[%s7219_s5 + $0x334] ss:$8 sps:$4 sm:$0xff]  }
 0x271   :  { %v6281_v13 = vpop.permute.xlu1 %994  ;;  %2176 = vmatprep.subr.bf16.mxu0 %v5117_v14  ;;  %v1128_v10 = vsel %vm1028_vm4, %v6162_v44, %v993_v37  ;;  %v5121_v44 = vld [vmem:[%s7219_s5 + $0x270] ss:$8 sps:$4 sm:$0xff]  }
 0x272   :  { %1089 = vrot.lane.b32.xlu0 %v6130_v38, %s5345_s27  ;;  %v1031_v20 = vsel %vm1028_vm4, %v993_v37, %v6281_v13  ;;  %v5123_v38 = vld [vmem:[%s7219_s5 + $0x274] ss:$8 sps:$4 sm:$0xff]   ;;  %v5157_v37 = vld [vmem:[%s7219_s5 + $0x330] ss:$8 sps:$4 sm:$0xff]  }
 0x273   :  { %2109 = vmatprep.mubr.bf16.mxu0 %v1031_v20 }
 0x274   :  { %2110 = vmatmul.mubr.bf16.gmra.mrb[60].mxu0 %v1128_v10 }
 0x275   :  { %2177 = vmatpush1.bf16.msra.mxu0 %v5115_v45  ;;  %v5162_v45 = vld [vmem:[%s7219_s5 + $0x344] ss:$8 sps:$4 sm:$0xff]  }
 0x276   :  { %1095 = vrot.lane.b32.xlu0 %v5940_v2, %s5345_s27  ;;  %2178 = vmatprep.subr.bf16.mxu0 %v5120_v46  ;;  %v5126_v2 = vld [vmem:[%s7219_s5 + $0x284] ss:$8 sps:$4 sm:$0xff]  }
 0x278   :  { %v999_v47 = vpop.permute.xlu0 %998 }
 0x279   :  { %v6303_v48 = vpop.permute.xlu1 %1000  ;;  %2179 = vmatpush1.bf16.msra.mxu0 %v5118_v35  ;;  %v1132_v54 = vsel %vm1028_vm4, %v6176_v56, %v999_v47  ;;  %v5165_v35 = vld [vmem:[%s7219_s5 + $0x354] ss:$8 sps:$4 sm:$0xff]  }
 0x27a   :  { %v1033_v53 = vsel %vm1028_vm4, %v999_v47, %v6303_v48  ;;  %2180 = vmatprep.subr.bf16.mxu0 %v5123_v38  ;;  %v5163_v47 = vld [vmem:[%s7219_s5 + $0x350] ss:$8 sps:$4 sm:$0xff]  }
 0x27b   :  { %2119 = vmatprep.mubr.bf16.mxu0 %v1033_v53 }
 0x27c   :  { %2120 = vmatmul.mubr.bf16.gmra.mrb[64].mxu0 %v1132_v54 }
 0x27d   :  { %2181 = vmatpush1.bf16.msra.mxu0 %v5121_v44  ;;  %v5168_v44 = vld [vmem:[%s7219_s5 + $0x364] ss:$8 sps:$4 sm:$0xff]  }
 0x27e   :  { %2182 = vmatprep.subr.bf16.mxu0 %v5126_v2 }
 0x280   :  { %v1005_v9 = vpop.permute.xlu0 %1004 }
 0x281   :  { %v6321_v60 = vpop.permute.xlu1 %1006  ;;  %2183 = vmatpush1.bf16.msra.mxu0 %v5124_v55  ;;  %v1136_v63 = vsel %vm1028_vm4, %v6187_v41, %v1005_v9  ;;  %v5171_v55 = vld [vmem:[%s7219_s5 + $0x374] ss:$8 sps:$4 sm:$0xff]  }
 0x282   :  { %v1035_v56 = vsel %vm1028_vm4, %v1005_v9, %v6321_v60  ;;  %2184 = vmatprep.subr.bf16.mxu0 %v5129_v59  ;;  %v5169_v9 = vld [vmem:[%s7219_s5 + $0x370] ss:$8 sps:$4 sm:$0xff]  }
 0x283   :  { %2129 = vmatprep.mubr.bf16.mxu0 %v1035_v56 }
 0x284   :  { %2130 = vmatmul.mubr.bf16.gmra.mrb[68].mxu0 %v1136_v63 }
 0x285   :  { %2185 = vmatpush1.bf16.msra.mxu0 %v5127_v62  ;;  %v5174_v62 = vld [vmem:[%s7219_s5 + $0x384] ss:$8 sps:$4 sm:$0xff]  }
 0x286   :  { %2186 = vmatprep.subr.bf16.mxu0 %v5132_v22 }
 0x288   :  { %v1011_v58 = vpop.permute.xlu0 %1010 }
 0x289   :  { %v6339_v4 = vpop.permute.xlu1 %1012  ;;  %2187 = vmatpush1.bf16.msra.mxu0 %v5130_v39  ;;  %v1140_v6 = vsel %vm1028_vm4, %v6198_v61, %v1011_v58  ;;  %v5177_v39 = vld [vmem:[%s7219_s5 + $0x394] ss:$8 sps:$4 sm:$0xff]  }
 0x28a   :  { %v1037_v41 = vsel %vm1028_vm4, %v1011_v58, %v6339_v4  ;;  %2188 = vmatprep.subr.bf16.mxu0 %v5135_v1  ;;  %v5175_v58 = vld [vmem:[%s7219_s5 + $0x390] ss:$8 sps:$4 sm:$0xff]  }
 0x28b   :  { %2139 = vmatprep.mubr.bf16.mxu0 %v1037_v41  ;;  %v5180_v41 = vld [vmem:[%s7219_s5 + $0x3a4] ss:$8 sps:$4 sm:$0xff]  }
 0x28c   :  { %2140 = vmatmul.mubr.bf16.gmra.mrb[72].mxu0 %v1140_v6 }
 0x28d   :  { %2189 = vmatpush1.bf16.msra.mxu0 %v5133_v5 }
 0x28e   :  { %2190 = vmatprep.subr.bf16.mxu0 %v5138_v23 }
 0x290   :  { %v1017_v40 = vpop.permute.xlu0 %1016 }
 0x291   :  { %v6357_v11 = vpop.permute.xlu1 %1018  ;;  %2191 = vmatpush1.bf16.msra.mxu0 %v5136_v8  ;;  %v1144_v28 = vsel %vm1028_vm4, %v6209_v7, %v1017_v40  ;;  %v5145_v7 = vld [vmem:[%s7219_s5 + $0x2f0] ss:$8 sps:$4 sm:$0xff]   ;;  %v5183_v8 = vld [vmem:[%s7219_s5 + $0x3b4] ss:$8 sps:$4 sm:$0xff]  }
 0x292   :  { %v1039_v61 = vsel %vm1028_vm4, %v1017_v40, %v6357_v11  ;;  %2192 = vmatprep.subr.bf16.mxu0 %v5141_v42 }
 0x293   :  { %2149 = vmatprep.mubr.bf16.mxu0 %v1039_v61 }
 0x294   :  { %2150 = vmatmul.mubr.bf16.gmra.mrb[76].mxu0 %v1144_v28  ;;  %v1023_v31 = vpop.permute.xlu0 %1022  ;;  %v5186_v28 = vld [vmem:[%s7219_s5 + $0x3c4] ss:$8 sps:$4 sm:$0xff]  }
 0x295   :  { %v6369_v19 = vpop.permute.xlu1 %1024  ;;  %2193 = vmatpush1.bf16.msra.mxu0 %v5139_v12  ;;  %v1148_v17 = vsel %vm1028_vm4, %v6220_v43, %v1023_v31 }
 0x296   :  { %v1041_v16 = vsel %vm1028_vm4, %v1023_v31, %v6369_v19  ;;  %2194 = vmatprep.subr.bf16.mxu0 %v5144_v18  ;;  %v5181_v18 = vld [vmem:[%s7219_s5 + $0x3b0] ss:$8 sps:$4 sm:$0xff]   ;;  %v5184_v31 = vld [vmem:[%s7219_s5 + $0x3c0] ss:$8 sps:$4 sm:$0xff]  }
 0x297   :  { %2159 = vmatprep.mubr.bf16.mxu0 %v1041_v16 }
 0x299   :  { %2195 = vmatpush1.bf16.msra.mxu0 %v5142_v3  ;;  %v6387_v24 = vpop.permute.xlu1 %1057  ;;  %v5189_v3 = vld [vmem:[%s7219_s5 + $0x3d4] ss:$8 sps:$4 sm:$0xff]  }
 0x29a   :  { %2196 = vmatprep.subr.bf16.mxu0 %v5147_v30 }
 0x29c   :  { %2160 = vmatmul.mubr.bf16.gmra.mrb[84].mxu0 %v1148_v17  ;;  %v5192_v17 = vld [vmem:[%s7219_s5 + $0x3e4] ss:$8 sps:$4 sm:$0xff]  }
 0x29d   :  { %2197 = vmatpush1.bf16.msra.mxu0 %v5145_v7  ;;  %v6405_v36 = vpop.permute.xlu1 %1063 }
 0x29e   :  { %2265 = vmatprep.subr.bf16.mxu0 %v5150_v51  ;;  %v5187_v51 = vld [vmem:[%s7219_s5 + $0x3d0] ss:$8 sps:$4 sm:$0xff]  }
 0x2a0   :  { %v991_v25 = vpop.permute.xlu0 %990 }
 0x2a1   :  { %v1153_v27 = vsel %vm1099_vm5, %v991_v25, %v6387_v24  ;;  %v1030_v43 = vsel %vm1028_vm4, %v6235_v21, %v991_v25  ;;  %v5154_v21 = vld [vmem:[%s7219_s5 + $0x320] ss:$8 sps:$4 sm:$0xff]   ;;  %v6423_v20 = vpop.permute.xlu1 %1069 }
 0x2a2   :  { %2198 = vmatprep.mubr.bf16.mxu0 %v1153_v27 }
 0x2a4   :  { %2199 = vmatmul.mubr.bf16.vlgmr.msra.gmra.mrb[56].mxu0 %v1030_v43 }
 0x2a5   :  { %2266 = vmatpush1.bf16.msra.mxu0 %v5148_v26  ;;  %v6441_v53 = vpop.permute.xlu1 %1075 }
 0x2a6   :  { %2267 = vmatprep.subr.bf16.mxu0 %v5153_v29 }
 0x2a8   :  { %v997_v34 = vpop.permute.xlu0 %996 }
 0x2a9   :  { %2268 = vmatpush1.bf16.msra.mxu0 %v5151_v33  ;;  %v1157_v57 = vsel %vm1099_vm5, %v997_v34, %v6405_v36  ;;  %v1032_v14 = vsel %vm1028_vm4, %v6281_v13, %v997_v34  ;;  %v5160_v13 = vld [vmem:[%s7219_s5 + $0x340] ss:$8 sps:$4 sm:$0xff]   ;;  %v6459_v56 = vpop.permute.xlu1 %1081 }
 0x2aa   :  { %2208 = vmatprep.mubr.bf16.mxu0 %v1157_v57  ;;  %2269 = vmatprep.subr.bf16.mxu0 %v5156_v15 }
 0x2ac   :  { %2209 = vmatmul.mubr.bf16.gmra.mrb[60].mxu0 %v1032_v14 }
 0x2ad   :  { %2270 = vmatpush1.bf16.msra.mxu0 %v5154_v21  ;;  %v6474_v5 = vpop.permute.xlu1 %1087 }
 0x2ae   :  { %2271 = vmatprep.subr.bf16.mxu0 %v5159_v52 }
 0x2b0   :  { %v1003_v46 = vpop.permute.xlu0 %1002 }
 0x2b1   :  { %2272 = vmatpush1.bf16.msra.mxu0 %v5157_v37  ;;  %v1161_v10 = vsel %vm1099_vm5, %v1003_v46, %v6423_v20  ;;  %v1034_v38 = vsel %vm1028_vm4, %v6303_v48, %v1003_v46  ;;  %v5166_v48 = vld [vmem:[%s7219_s5 + $0x360] ss:$8 sps:$4 sm:$0xff]   ;;  %v6489_v40 = vpop.permute.xlu1 %1093 }
 0x2b2   :  { %2218 = vmatprep.mubr.bf16.mxu0 %v1161_v10  ;;  %2273 = vmatprep.subr.bf16.mxu0 %v5162_v45 }
 0x2b4   :  { %2219 = vmatmul.mubr.bf16.gmra.mrb[64].mxu0 %v1034_v38 }
 0x2b5   :  { %2274 = vmatpush1.bf16.msra.mxu0 %v5160_v13  ;;  %v1062_v16 = vpop.permute.xlu1 %1061  ;;  %v5194_v13 = vld [vmem:[%s7221_s7 + $0x8] sm:$0xff]  }
 0x2b6   :  { %2275 = vmatprep.subr.bf16.mxu0 %v5165_v35 }
 0x2b8   :  { %v1009_v2 = vpop.permute.xlu0 %1008 }
 0x2b9   :  { %2276 = vmatpush1.bf16.msra.mxu0 %v5163_v47  ;;  %v1165_v54 = vsel %vm1099_vm5, %v1009_v2, %v6441_v53  ;;  %v1036_v59 = vsel %vm1028_vm4, %v6321_v60, %v1009_v2  ;;  %v5172_v60 = vld [vmem:[%s7219_s5 + $0x380] ss:$8 sps:$4 sm:$0xff]   ;;  %v1068_v27 = vpop.permute.xlu1 %1067  ;;  %v5195_v2 = vld [vmem:[%s7221_s7 + $0x10] sm:$0xff]  }
 0x2ba   :  { %2228 = vmatprep.mubr.bf16.mxu0 %v1165_v54  ;;  %2277 = vmatprep.subr.bf16.mxu0 %v5168_v44  ;;  %v5198_v44 = vld [vmem:[%s7221_s7 + $0xc8] sm:$0xff]  }
 0x2bc   :  { %2229 = vmatmul.mubr.bf16.gmra.mrb[68].mxu0 %v1036_v59 }
 0x2bd   :  { %2278 = vmatpush1.bf16.msra.mxu0 %v5166_v48  ;;  %v1074_v33 = vpop.permute.xlu1 %1073  ;;  %v5197_v48 = vld [vmem:[%s7221_s7 + $0x18] sm:$0xff]  }
 0x2be   :  { %2279 = vmatprep.subr.bf16.mxu0 %v5171_v55  ;;  %v5202_v55 = vld [vmem:[%s7221_s7 + $0xd8] sm:$0xff]  }
 0x2c0   :  { %v1015_v22 = vpop.permute.xlu0 %1014 }
 0x2c1   :  { %2280 = vmatpush1.bf16.msra.mxu0 %v5169_v9  ;;  %v1169_v63 = vsel %vm1099_vm5, %v1015_v22, %v6459_v56  ;;  %v1038_v1 = vsel %vm1028_vm4, %v6339_v4, %v1015_v22  ;;  %v5178_v4 = vld [vmem:[%s7219_s5 + $0x3a0] ss:$8 sps:$4 sm:$0xff]   ;;  %v1080_v21 = vpop.permute.xlu1 %1079 }
 0x2c2   :  { %2238 = vmatprep.mubr.bf16.mxu0 %v1169_v63  ;;  %2281 = vmatprep.subr.bf16.mxu0 %v5174_v62  ;;  %v5199_v62 = vld [vmem:[%s7221_s7 + $0x20] sm:$0xff]  }
 0x2c3   :  { %v5204_v63 = vld [vmem:[%s7221_s7 + $0xe0] sm:$0xff]  }
 0x2c4   :  { %2239 = vmatmul.mubr.bf16.gmra.mrb[72].mxu0 %v1038_v1 }
 0x2c5   :  { %2282 = vmatpush1.bf16.msra.mxu0 %v5172_v60  ;;  %v1086_v35 = vpop.permute.xlu1 %1085 }
 0x2c6   :  { %2283 = vmatprep.subr.bf16.mxu0 %v5177_v39 }
 0x2c8   :  { %v1021_v23 = vpop.permute.xlu0 %1020 }
 0x2c9   :  { %2284 = vmatpush1.bf16.msra.mxu0 %v5175_v58  ;;  %v1173_v6 = vsel %vm1099_vm5, %v1021_v23, %v6474_v5  ;;  %v1040_v42 = vsel %vm1028_vm4, %v6357_v11, %v1021_v23  ;;  %v1092_v59 = vpop.permute.xlu1 %1091  ;;  %v5203_v58 = vld [vmem:[%s7221_s7 + $0x30] sm:$0xff]   ;;  %v5205_v23 = vld [vmem:[%s7221_s7 + $0x38] sm:$0xff]  }
 0x2ca   :  { %2248 = vmatprep.mubr.bf16.mxu0 %v1173_v6  ;;  %2285 = vmatprep.subr.bf16.mxu0 %v5180_v41  ;;  %v5206_v6 = vld [vmem:[%s7221_s7 + $0xe8] sm:$0xff]  }
 0x2cc   :  { %2249 = vmatmul.mubr.bf16.gmra.mrb[76].mxu0 %v1040_v42  ;;  %v1027_v12 = vpop.permute.xlu0 %1026  ;;  %v5209_v42 = vld [vmem:[%s7221_s7 + $0x48] sm:$0xff]  }
 0x2cd   :  { %2286 = vmatpush1.bf16.msra.mxu0 %v5178_v4  ;;  %v1177_v61 = vsel %vm1099_vm5, %v1027_v12, %v6489_v40  ;;  %v1042_v30 = vsel %vm1028_vm4, %v6369_v19, %v1027_v12  ;;  %v5190_v19 = vld [vmem:[%s7219_s5 + $0x3e0] ss:$8 sps:$4 sm:$0xff]   ;;  %v1098_v39 = vpop.permute.xlu1 %1097  ;;  %v5211_v12 = vld [vmem:[%s7221_s7 + $0x50] sm:$0xff]  }
 0x2ce   :  { %2258 = vmatprep.mubr.bf16.mxu0 %v1177_v61  ;;  %2287 = vmatprep.subr.bf16.mxu0 %v5183_v8  ;;  %v5207_v4 = vld [vmem:[%s7221_s7 + $0x40] sm:$0xff]   ;;  %v5208_v8 = vld [vmem:[%s7221_s7 + $0xf0] sm:$0xff]  }
 0x2cf   :  { %v5212_v61 = vld [vmem:[%s7221_s7 + $0x100] sm:$0xff]  }
 0x2d0   :  { %v1060_v11 = vpop.permute.xlu0 %1059 }
 0x2d1   :  { %2288 = vmatpush1.bf16.msra.mxu0 %v5181_v18  ;;  %v1101_v7 = vsel %vm1099_vm5, %v1060_v11, %v1062_v16  ;;  %v1100_v26 = vsel %vm1099_vm5, %v6387_v24, %v1060_v11  ;;  %v5213_v18 = vld [vmem:[%s7221_s7 + $0x58] sm:$0xff]   ;;  %v5216_v11 = vld [vmem:[%s7221_s7 + $0x110] sm:$0xff]  }
 0x2d2   :  { %2289 = vmatprep.subr.bf16.mxu0 %v5186_v28  ;;  %v5214_v28 = vld [vmem:[%s7221_s7 + $0x108] sm:$0xff]  }
 0x2d4   :  { %2259 = vmatmul.mubr.bf16.gmra.mrb[88].mxu0 %v1042_v30  ;;  %v1066_v25 = vpop.permute.xlu0 %1065 }
 0x2d5   :  { %2290 = vmatpush1.bf16.msra.mxu0 %v5184_v31  ;;  %4318 = vmatprep.mubr.msk.bf16.mxu0 %vm370_vm2, %v1101_v7  ;;  %v1103_v29 = vsel %vm1099_vm5, %v1066_v25, %v1068_v27  ;;  %v1102_v15 = vsel %vm1099_vm5, %v6405_v36, %v1066_v25  ;;  %v5193_v36 = vld [vmem:[%s7221_s7] sm:$0xff]   ;;  %v5218_v31 = vld [vmem:[%s7221_s7 + $0x118] sm:$0xff]  }
 0x2d6   :  { %2291 = vmatprep.subr.bf16.mxu0 %v5189_v3  ;;  %v1305_v27 = vld [vmem:[%s7222_s6] sm:$0x3] }
 0x2d8   :  { %v1072_v43 = vpop.permute.xlu0 %1071 }
 0x2d9   :  { %2292 = vmatpush1.bf16.msra.mxu0 %v5187_v51  ;;  %v1105_v34 = vsel %vm1099_vm5, %v1072_v43, %v1074_v33  ;;  %v1104_v24 = vsel %vm1099_vm5, %v6423_v20, %v1072_v43  ;;  %v5196_v20 = vld [vmem:[%s7221_s7 + $0xc0] sm:$0xff]  }
 0x2da   :  { %2293 = vmatprep.subr.bf16.mxu0 %v5192_v17  ;;  %2795 = vmatpush1.bf16.msra.mxu1 %v5196_v20 }
 0x2db   :  { %2796 = vmatprep.subr.bf16.mxu1 %v5341_v0 }
 0x2dc   :  { %v1078_v57 = vpop.permute.xlu0 %1077 }
 0x2dd   :  { %2294 = vmatpush1.bf16.msra.mxu0 %v5190_v19  ;;  %v1107_v52 = vsel %vm1099_vm5, %v1078_v57, %v1080_v21  ;;  %v1106_v38 = vsel %vm1099_vm5, %v6441_v53, %v1078_v57  ;;  %v5200_v53 = vld [vmem:[%s7221_s7 + $0xd0] sm:$0xff]  }
 0x2de   :  { %2501 = vmatprep.subr.bf16.mxu0 %v5341_v0  ;;  %2797 = vmatpush1.bf16.msra.mxu1 %v5198_v44 }
 0x2df   :  { %2798 = vmatprep.subr.bf16.mxu1 %v5341_v0 }
 0x2e0   :  { %2298 = vmatmul.mubr.bf16.vlgmr.msra.gmra.mrb[56].mxu0 %v1100_v26  ;;  %v1084_v10 = vpop.permute.xlu0 %1083  ;;  %v6646_v26 = vrot.slane %v1305_v27, %v445_v32 }
 0x2e1   :  { %4319 = vmatprep.mubr.msk.bf16.mxu0 %vm370_vm2, %v1103_v29  ;;  %2502 = vmatpush1.bf16.msra.mxu0 %v5193_v36  ;;  %v1109_v47 = vsel %vm1099_vm5, %v1084_v10, %v1086_v35  ;;  %v1108_v9 = vsel %vm1099_vm5, %v6459_v56, %v1084_v10  ;;  %v5201_v56 = vld [vmem:[%s7221_s7 + $0x28] sm:$0xff]   ;;  %v6650_v29 = vrot.slane %v1305_v27, %v449_v50  ;;  %v5215_v36 = vld [vmem:[%s7221_s7 + $0x60] sm:$0xff]  }
 0x2e2   :  { %2503 = vmatprep.subr.bf16.mxu0 %v5341_v0  ;;  %2799 = vmatpush1.bf16.msra.mxu1 %v5200_v53  ;;  %v5217_v53 = vld [vmem:[%s7221_s7 + $0x68] sm:$0xff]  }
 0x2e3   :  { %2800 = vmatprep.subr.bf16.mxu1 %v5341_v0  ;;  %v5225_v27 = vld [vmem:[%s7221_s7 + $0x88] sm:$0xff]  }
 0x2e4   :  { %v1090_v54 = vpop.permute.xlu0 %1089 }
 0x2e5   :  { %2504 = vmatpush1.bf16.msra.mxu0 %v5194_v13  ;;  %v1111_v22 = vsel %vm1099_vm5, %v1090_v54, %v1092_v59  ;;  %v1110_v1 = vsel %vm1099_vm5, %v6474_v5, %v1090_v54 }
 0x2e6   :  { %2505 = vmatprep.subr.bf16.mxu0 %v5341_v0  ;;  %2801 = vmatpush1.bf16.msra.mxu1 %v5202_v55 }
 0x2e7   :  { %2802 = vmatprep.subr.bf16.mxu1 %v5341_v0 }
 0x2e8   :  { %2308 = vmatmul.mubr.bf16.gmra.mrb[60].mxu0 %v1102_v15  ;;  %v1096_v60 = vpop.permute.xlu0 %1095 }
 0x2e9   :  { %4320 = vmatprep.mubr.msk.bf16.mxu0 %vm370_vm2, %v1105_v34  ;;  %2506 = vmatpush1.bf16.msra.mxu0 %v5195_v2  ;;  %v1113_v41 = vsel %vm1099_vm5, %v1096_v60, %v1098_v39  ;;  %v1112_v5 = vsel %vm1099_vm5, %v6489_v40, %v1096_v60  ;;  %v5210_v40 = vld [vmem:[%s7221_s7 + $0xf8] sm:$0xff]  }
 0x2ea   :  { %2507 = vmatprep.subr.bf16.mxu0 %v5341_v0  ;;  %2803 = vmatpush1.bf16.msra.mxu1 %v5204_v63  ;;  %v5219_v63 = vld [vmem:[%s7221_s7 + $0x70] sm:$0xff]  }
 0x2eb   :  { %2804 = vmatprep.subr.bf16.mxu1 %v5341_v0 }
 0x2ed   :  { %2508 = vmatpush1.bf16.msra.mxu0 %v5197_v48 }
 0x2ee   :  { %2509 = vmatprep.subr.bf16.mxu0 %v5341_v0  ;;  %2805 = vmatpush1.bf16.msra.mxu1 %v5206_v6 }
 0x2ef   :  { %2806 = vmatprep.subr.bf16.mxu1 %v5341_v0 }
 0x2f0   :  { %2318 = vmatmul.mubr.bf16.gmra.mrb[64].mxu0 %v1104_v24  ;;  %v2062_v14 = vpop.f32.mrb[80].mxu0 }
 0x2f1   :  { %4321 = vmatprep.mubr.msk.bf16.mxu0 %vm370_vm2, %v1107_v52  ;;  %v2063_v37 = vpop.f32.mrb[81].mxu0  ;;  %2510 = vmatpush1.bf16.msra.mxu0 %v5199_v62 }
 0x2f2   :  { %v2064_v45 = vpop.f32.mrb[82].mxu0  ;;  %2511 = vmatprep.subr.bf16.mxu0 %v5341_v0  ;;  %2807 = vmatpush1.bf16.msra.mxu1 %v5208_v8  ;;  %v5222_v8 = vld [vmem:[%s7221_s7 + $0x128] sm:$0xff]  }
 0x2f3   :  { %v2065_v46 = vpop.f32.mrb[83].mxu0  ;;  %2808 = vmatprep.subr.bf16.mxu1 %v5341_v0 }
 0x2f5   :  { %2512 = vmatpush1.bf16.msra.mxu0 %v5201_v56  ;;  %v5220_v56 = vld [vmem:[%s7221_s7 + $0x120] sm:$0xff]  }
 0x2f6   :  { %2513 = vmatprep.subr.bf16.mxu0 %v5341_v0  ;;  %2809 = vmatpush1.bf16.msra.mxu1 %v5210_v40 }
 0x2f7   :  { %2810 = vmatprep.subr.bf16.mxu1 %v5341_v0 }
 0x2f8   :  { %2328 = vmatmul.mubr.bf16.gmra.mrb[68].mxu0 %v1106_v38 }
 0x2f9   :  { %4322 = vmatprep.mubr.msk.bf16.mxu0 %vm370_vm2, %v1109_v47  ;;  %2514 = vmatpush1.bf16.msra.mxu0 %v5203_v58 }
 0x2fa   :  { %2515 = vmatprep.subr.bf16.mxu0 %v5341_v0  ;;  %2811 = vmatpush1.bf16.msra.mxu1 %v5212_v61 }
 0x2fb   :  { %2812 = vmatprep.subr.bf16.mxu1 %v5341_v0 }
 0x2fd   :  { %2516 = vmatpush1.bf16.msra.mxu0 %v5205_v23 }
 0x2fe   :  { %2517 = vmatprep.subr.bf16.mxu0 %v5341_v0  ;;  %2813 = vmatpush1.bf16.msra.mxu1 %v5214_v28 }
 0x2ff   :  { %2814 = vmatprep.subr.bf16.mxu1 %v5341_v0 }
 0x300   :  { %2338 = vmatmul.mubr.bf16.gmra.mrb[72].mxu0 %v1108_v9 }
 0x301   :  { %4323 = vmatprep.mubr.msk.bf16.mxu0 %vm370_vm2, %v1111_v22  ;;  %2518 = vmatpush1.bf16.msra.mxu0 %v5207_v4  ;;  %v5221_v4 = vld [vmem:[%s7221_s7 + $0x78] sm:$0xff]  }
 0x302   :  { %2519 = vmatprep.subr.bf16.mxu0 %v5341_v0  ;;  %2815 = vmatpush1.bf16.msra.mxu1 %v5216_v11 }
 0x303   :  { %2816 = vmatprep.subr.bf16.mxu1 %v5341_v0 }
 0x305   :  { %2520 = vmatpush1.bf16.msra.mxu0 %v5209_v42 }
 0x306   :  { %2521 = vmatprep.subr.bf16.mxu0 %v5341_v0  ;;  %2817 = vmatpush1.bf16.msra.mxu1 %v5218_v31  ;;  %v5223_v31 = vld [vmem:[%s7221_s7 + $0x80] sm:$0xff]  }
 0x307   :  { %2940 = vmatprep.subr.bf16.mxu1 %v5341_v0 }
 0x308   :  { %2348 = vmatmul.mubr.bf16.gmra.mrb[76].mxu0 %v1110_v1 }
 0x309   :  { %4324 = vmatprep.mubr.msk.bf16.mxu0 %vm370_vm2, %v1113_v41  ;;  %2522 = vmatpush1.bf16.msra.mxu0 %v5211_v12 }
 0x30a   :  { %2523 = vmatprep.subr.bf16.mxu0 %v5341_v0 }
 0x30d   :  { %2524 = vmatpush1.bf16.msra.mxu0 %v5213_v18 }
 0x30e   :  { %2653 = vmatprep.subr.bf16.mxu0 %v5341_v0 }
 0x310   :  { %2358 = vmatmul.mubr.bf16.gmra.mrb[92].mxu0 %v1112_v5 }
 0x36f   :  { %v2161_v3 = vpop.f32.mrb[84].mxu0 }
 0x370   :  { %v2162_v16 = vpop.f32.mrb[85].mxu0  ;;  %v5224_v3 = vld [vmem:[%s7221_s7 + $0x130] sm:$0xff]  }
 0x371   :  { %v2163_v30 = vpop.f32.mrb[86].mxu0 }
 0x372   :  { %v2164_v7 = vpop.f32.mrb[87].mxu0 }
 0x3a7   :  { %v2260_v51 = vpop.f32.mrb[88].mxu0 }
 0x3a8   :  { %v2261_v17 = vpop.f32.mrb[89].mxu0 }
 0x3a9   :  { %v2262_v19 = vpop.f32.mrb[90].mxu0 }
 0x3aa   :  { %v2263_v25 = vpop.f32.mrb[91].mxu0 }
 0x3b3   :  { %v2299_v43 = vpop.f32.mrb[56].mxu0 }
 0x3b4   :  { %v4746_v33 = vadd.f32 %v2299_v43, %v6646_v26  ;;  %v2301_v15 = vpop.f32.mrb[57].mxu0  ;;  %v5226_v43 = vld [vmem:[%s7221_s7 + $0x138] sm:$0xff]  }
 0x3b5   :  { %v4747_v34 = vadd.f32 %v2301_v15, %v6650_v29  ;;  %v2303_v57 = vpop.f32.mrb[58].mxu0 }
 0x3b6   :  { %v4748_v21 = vadd.f32 %v2303_v57, %v6646_v26  ;;  %v2305_v24 = vpop.f32.mrb[59].mxu0  ;;  %v2364_v14 = vmax.f32 %v4746_v33, 0.0 }
 0x3b7   :  { %v4749_v52 = vadd.f32 %v2305_v24, %v6650_v29  ;;  %v2365_v32 = vmax.f32 %v4747_v34, 0.0 }
 0x3b8   :  { %v2366_v37 = vmax.f32 %v4748_v21, 0.0 }
 0x3b9   :  { %v2367_v45 = vmax.f32 %v4749_v52, 0.0 }
 0x3ba   :  { %v6656_v46 = vpack.c.bf16 %v2366_v37, %v2364_v14  ;;  %v5227_v14 = vld [vmem:[%s7221_s7 + $0x90] sm:$0xff]   ;;  %v5228_v37 = vld [vmem:[%s7221_s7 + $0x140] sm:$0xff]  }
 0x3bb   :  { %v2389_v49 = vpack.c.bf16 %v2367_v45, %v2365_v32  ;;  %v2309_v50 = vpop.f32.mrb[60].mxu0 }
 0x3bc   :  { %v4750_v10 = vadd.f32 %v2309_v50, %v6646_v26  ;;  %v2311_v13 = vpop.f32.mrb[61].mxu0 }
 0x3bd   :  { %v2576_v20 = vrot.slane %v2389_v49, 4  ;;  %v4751_v35 = vadd.f32 %v2311_v13, %v6650_v29  ;;  %v2313_v38 = vpop.f32.mrb[62].mxu0  ;;  %4337 = vmatprep.mubr.msk.bf16.mxu0 %vm2497_vm6, %v2389_v49 }
 0x3be   :  { %v4752_v47 = vadd.f32 %v2313_v38, %v6646_v26  ;;  %v2315_v44 = vpop.f32.mrb[63].mxu0  ;;  %2534 = vmatmul.mubr.bf16.vlgmr.msra.gmra.mrb[96].mxu0 %v6656_v46  ;;  %v2368_v54 = vmax.f32 %v4750_v10, 0.0 }
 0x3bf   :  { %v4753_v2 = vadd.f32 %v2315_v44, %v6650_v29  ;;  %2654 = vmatpush1.bf16.msra.mxu0 %v5215_v36  ;;  %4375 = vmatprep.mubr.msk.bf16.mxu0 %vm2497_vm6, %v2576_v20  ;;  %v2369_v55 = vmax.f32 %v4751_v35, 0.0  ;;  %v5229_v20 = vld [vmem:[%s7221_s7 + $0x98] sm:$0xff]   ;;  %v5230_v35 = vld [vmem:[%s7221_s7 + $0x148] sm:$0xff]  }
 0x3c0   :  { %v2370_v48 = vmax.f32 %v4752_v47, 0.0  ;;  %2655 = vmatprep.subr.bf16.mxu0 %v5341_v0 }
 0x3c1   :  { %v2371_v59 = vmax.f32 %v4753_v2, 0.0 }
 0x3c2   :  { %v6672_v9 = vpack.c.bf16 %v2370_v48, %v2368_v54 }
 0x3c3   :  { %2656 = vmatpush1.bf16.msra.mxu0 %v5217_v53  ;;  %v2319_v62 = vpop.f32.mrb[64].mxu0  ;;  %v2391_v22 = vpack.c.bf16 %v2371_v59, %v2369_v55  ;;  %v5231_v55 = vld [vmem:[%s7221_s7 + $0xa0] sm:$0xff]   ;;  %v5232_v59 = vld [vmem:[%s7221_s7 + $0x150] sm:$0xff]  }
 0x3c4   :  { %v4754_v60 = vadd.f32 %v2319_v62, %v6646_v26  ;;  %v2321_v39 = vpop.f32.mrb[65].mxu0  ;;  %2657 = vmatprep.subr.bf16.mxu0 %v5341_v0 }
 0x3c5   :  { %v4755_v1 = vadd.f32 %v2321_v39, %v6650_v29  ;;  %v2323_v58 = vpop.f32.mrb[66].mxu0  ;;  %4412 = vmatprep.mubr.msk.bf16.mxu1 %vm2497_vm6, %v2391_v22  ;;  %v2863_v41 = vrot.slane %v2391_v22, 4 }
 0x3c6   :  { %v4756_v5 = vadd.f32 %v2323_v58, %v6646_v26  ;;  %v2325_v23 = vpop.f32.mrb[67].mxu0  ;;  %2827 = vmatmul.mubr.bf16.vlgmr.msra.gmra.mrb[0].mxu1 %v6672_v9  ;;  %v2372_v42 = vmax.f32 %v4754_v60, 0.0  ;;  %v5233_v58 = vld [vmem:[%s7221_s7 + $0xa8] sm:$0xff]  }
 0x3c7   :  { %v4757_v6 = vadd.f32 %v2325_v23, %v6650_v29  ;;  %2658 = vmatpush1.bf16.msra.mxu0 %v5219_v63  ;;  %2941 = vmatpush1.bf16.msra.mxu1 %v5220_v56  ;;  %v2373_v12 = vmax.f32 %v4755_v1, 0.0 }
 0x3c8   :  { %v2374_v40 = vmax.f32 %v4756_v5, 0.0  ;;  %4449 = vmatprep.mubr.msk.bf16.mxu1 %vm2497_vm6, %v2863_v41  ;;  %2659 = vmatprep.subr.bf16.mxu0 %v5341_v0  ;;  %v5234_v41 = vld [vmem:[%s7221_s7 + $0x158] sm:$0xff]  }
 0x3c9   :  { %v2375_v61 = vmax.f32 %v4757_v6, 0.0  ;;  %2942 = vmatprep.subr.bf16.mxu1 %v5341_v0 }
 0x3ca   :  { %v6696_v18 = vpack.c.bf16 %v2374_v40, %v2372_v42  ;;  %v5235_v42 = vld [vmem:[%s7221_s7 + $0xb0] sm:$0xff]   ;;  %v5236_v40 = vld [vmem:[%s7221_s7 + $0x160] sm:$0xff]  }
 0x3cb   :  { %v6698_v28 = vpack.c.bf16 %v2375_v61, %v2373_v12  ;;  %2660 = vmatpush1.bf16.msra.mxu0 %v5221_v4  ;;  %2943 = vmatpush1.bf16.msra.mxu1 %v5222_v8  ;;  %v2329_v11 = vpop.f32.mrb[68].mxu0 }
 0x3cc   :  { %v4758_v16 = vadd.f32 %v2329_v11, %v6646_v26  ;;  %v2331_v30 = vpop.f32.mrb[69].mxu0  ;;  %2661 = vmatprep.subr.bf16.mxu0 %v5341_v0  ;;  %2944 = vmatprep.subr.bf16.mxu1 %v5341_v0 }
 0x3cd   :  { %v4759_v7 = vadd.f32 %v2331_v30, %v6650_v29  ;;  %v2333_v51 = vpop.f32.mrb[70].mxu0  ;;  %v2575_v30 = vrot.slane %v6656_v46, 4  ;;  %v5242_v46 = vld [vmem:[%s7221_s7 + $0x188] sm:$0xff]  }
 0x3ce   :  { %v4760_v17 = vadd.f32 %v2333_v51, %v6646_v26  ;;  %v2335_v19 = vpop.f32.mrb[71].mxu0  ;;  %v2376_v33 = vmax.f32 %v4758_v16, 0.0  ;;  %v5239_v16 = vld [vmem:[%s7221_s7 + $0x170] sm:$0xff]   ;;  %v5241_v51 = vld [vmem:[%s7221_s7 + $0x180] sm:$0xff]  }
 0x3cf   :  { %v4761_v25 = vadd.f32 %v2335_v19, %v6650_v29  ;;  %2662 = vmatpush1.bf16.msra.mxu0 %v5223_v31  ;;  %2945 = vmatpush1.bf16.msra.mxu1 %v5224_v3  ;;  %v2377_v34 = vmax.f32 %v4759_v7, 0.0  ;;  %v5237_v31 = vld [vmem:[%s7221_s7 + $0xb8] sm:$0xff]   ;;  %v5238_v3 = vld [vmem:[%s7221_s7 + $0x168] sm:$0xff]   ;;  %v5243_v19 = vld [vmem:[%s7221_s7 + $0x190] sm:$0xff]  }
 0x3d0   :  { %v2378_v15 = vmax.f32 %v4760_v17, 0.0  ;;  %2663 = vmatprep.subr.bf16.mxu0 %v5341_v0  ;;  %2946 = vmatprep.subr.bf16.mxu1 %v5341_v0  ;;  %v5240_v7 = vld [vmem:[%s7221_s7 + $0x178] sm:$0xff]   ;;  %v2862_v17 = vrot.slane %v6672_v9, 4 }
 0x3d1   :  { %v2379_v57 = vmax.f32 %v4761_v25, 0.0  ;;  %v5244_v9 = vld [vmem:[%s7221_s7 + $0x198] sm:$0xff]   ;;  %v5245_v25 = vld [vmem:[%s7221_s7 + $0x1a0] sm:$0xff]  }
 0x3d2   :  { %v6720_v21 = vpack.c.bf16 %v2378_v15, %v2376_v33  ;;  %v5248_v33 = vld [vmem:[%s7221_s7 + $0x1b8] sm:$0xff]   ;;  %v5249_v15 = vld [vmem:[%s7221_s7 + $0x1c0] sm:$0xff]  }
 0x3d3   :  { %v6722_v24 = vpack.c.bf16 %v2379_v57, %v2377_v34  ;;  %2664 = vmatpush1.bf16.msra.mxu0 %v5225_v27  ;;  %2947 = vmatpush1.bf16.msra.mxu1 %v5226_v43  ;;  %v2339_v52 = vpop.f32.mrb[72].mxu0  ;;  %v5246_v27 = vld [vmem:[%s7221_s7 + $0x1a8] sm:$0xff]   ;;  %v5247_v43 = vld [vmem:[%s7221_s7 + $0x1b0] sm:$0xff]  }
 0x3d4   :  { %v4762_v32 = vadd.f32 %v2339_v52, %v6646_v26  ;;  %v2341_v45 = vpop.f32.mrb[73].mxu0  ;;  %2665 = vmatprep.subr.bf16.mxu0 %v5341_v0  ;;  %2948 = vmatprep.subr.bf16.mxu1 %v5341_v0  ;;  %v5250_v34 = vld [vmem:[%s7221_s7 + $0x1c8] sm:$0xff]   ;;  %v5251_v57 = vld [vmem:[%s7221_s7 + $0x1d0] sm:$0xff]   ;;  %v5252_v52 = vld [vmem:[%s7221_s7 + $0x1d8] sm:$0xff]  }
 0x3d5   :  { %v4763_v49 = vadd.f32 %v2341_v45, %v6650_v29  ;;  %v2343_v50 = vpop.f32.mrb[74].mxu0  ;;  %v5255_v45 = vld [vmem:[%s7221_s7 + $0x1f0] sm:$0xff]  }
 0x3d6   :  { %v4764_v36 = vadd.f32 %v2343_v50, %v6646_v26  ;;  %v2345_v10 = vpop.f32.mrb[75].mxu0  ;;  %v2380_v38 = vmax.f32 %v4762_v32, 0.0  ;;  %v5254_v32 = vld [vmem:[%s7221_s7 + $0x1e8] sm:$0xff]  }
 0x3d7   :  { %v4765_v13 = vadd.f32 %v2345_v10, %v6650_v29  ;;  %2666 = vmatpush1.bf16.msra.mxu0 %v5227_v14  ;;  %2949 = vmatpush1.bf16.msra.mxu1 %v5228_v37  ;;  %v2381_v44 = vmax.f32 %v4763_v49, 0.0  ;;  %v5253_v14 = vld [vmem:[%s7221_s7 + $0x1e0] sm:$0xff]   ;;  %v3150_v37 = vrot.slane %v6698_v28, 4  ;;  %v5258_v50 = vld [vmem:[%s7221_s7 + $0x208] sm:$0xff]   ;;  %v5260_v10 = vld [vmem:[%s7221_s7 + $0x218] sm:$0xff]  }
 0x3d8   :  { %v2382_v47 = vmax.f32 %v4764_v36, 0.0  ;;  %2667 = vmatprep.subr.bf16.mxu0 %v5341_v0  ;;  %2950 = vmatprep.subr.bf16.mxu1 %v5341_v0  ;;  %v5257_v49 = vld [vmem:[%s7221_s7 + $0x200] sm:$0xff]   ;;  %v5259_v36 = vld [vmem:[%s7221_s7 + $0x210] sm:$0xff]  }
 0x3d9   :  { %v2383_v2 = vmax.f32 %v4765_v13, 0.0  ;;  %v5261_v13 = vld [vmem:[%s7221_s7 + $0x220] sm:$0xff]  }
 0x3da   :  { %v6744_v53 = vpack.c.bf16 %v2382_v47, %v2380_v38  ;;  %v5264_v38 = vld [vmem:[%s7221_s7 + $0x238] sm:$0xff]   ;;  %v5265_v47 = vld [vmem:[%s7221_s7 + $0x240] sm:$0xff]  }
 0x3db   :  { %v6746_v54 = vpack.c.bf16 %v2383_v2, %v2381_v44  ;;  %2668 = vmatpush1.bf16.msra.mxu0 %v5229_v20  ;;  %2951 = vmatpush1.bf16.msra.mxu1 %v5230_v35  ;;  %v2349_v48 = vpop.f32.mrb[76].mxu0  ;;  %v5262_v20 = vld [vmem:[%s7221_s7 + $0x228] sm:$0xff]   ;;  %v5263_v35 = vld [vmem:[%s7221_s7 + $0x230] sm:$0xff]   ;;  %v3149_v44 = vrot.slane %v6696_v18, 4 }
 0x3dc   :  { %v4766_v62 = vadd.f32 %v2349_v48, %v6646_v26  ;;  %v2351_v22 = vpop.f32.mrb[77].mxu0  ;;  %2669 = vmatprep.subr.bf16.mxu0 %v5341_v0  ;;  %2952 = vmatprep.subr.bf16.mxu1 %v5341_v0  ;;  %v5266_v2 = vld [vmem:[%s7221_s7 + $0x248] sm:$0xff]   ;;  %v5267_v48 = vld [vmem:[%s7221_s7 + $0x250] sm:$0xff]  }
 0x3dd   :  { %v4767_v63 = vadd.f32 %v2351_v22, %v6650_v29  ;;  %v2353_v56 = vpop.f32.mrb[78].mxu0  ;;  %v5272_v22 = vld [vmem:[%s7221_s7 + $0x278] sm:$0xff]  }
 0x3de   :  { %v4768_v60 = vadd.f32 %v2353_v56, %v6646_v26  ;;  %v2355_v39 = vpop.f32.mrb[79].mxu0  ;;  %v2384_v5 = vmax.f32 %v4766_v62, 0.0  ;;  %v5271_v62 = vld [vmem:[%s7221_s7 + $0x270] sm:$0xff]   ;;  %v5274_v56 = vld [vmem:[%s7221_s7 + $0x288] sm:$0xff]  }
 0x3df   :  { %v4769_v1 = vadd.f32 %v2355_v39, %v6650_v29  ;;  %2670 = vmatpush1.bf16.msra.mxu0 %v5231_v55  ;;  %2953 = vmatpush1.bf16.msra.mxu1 %v5232_v59  ;;  %v2385_v26 = vmax.f32 %v4767_v63, 0.0  ;;  %v5269_v55 = vld [vmem:[%s7221_s7 + $0x260] sm:$0xff]   ;;  %v5270_v59 = vld [vmem:[%s7221_s7 + $0x268] sm:$0xff]   ;;  %v5276_v39 = vld [vmem:[%s7221_s7 + $0x298] sm:$0xff]  }
 0x3e0   :  { %v2386_v23 = vmax.f32 %v4768_v60, 0.0  ;;  %2671 = vmatprep.subr.bf16.mxu0 %v5341_v0  ;;  %2954 = vmatprep.subr.bf16.mxu1 %v5341_v0  ;;  %v5273_v63 = vld [vmem:[%s7221_s7 + $0x280] sm:$0xff]   ;;  %v5275_v60 = vld [vmem:[%s7221_s7 + $0x290] sm:$0xff]  }
 0x3e1   :  { %v2387_v6 = vmax.f32 %v4769_v1, 0.0  ;;  %v5277_v1 = vld [vmem:[%s7221_s7 + $0x2a0] sm:$0xff]  }
 0x3e2   :  { %v6768_v4 = vpack.c.bf16 %v2386_v23, %v2384_v5  ;;  %v5279_v5 = vld [vmem:[%s7221_s7 + $0x2b0] sm:$0xff]   ;;  %v5281_v23 = vld [vmem:[%s7221_s7 + $0x2c0] sm:$0xff]  }
 0x3e3   :  { %v6770_v29 = vpack.c.bf16 %v2387_v6, %v2385_v26  ;;  %2672 = vmatpush1.bf16.msra.mxu0 %v5233_v58  ;;  %2955 = vmatpush1.bf16.msra.mxu1 %v5234_v41  ;;  %v2359_v8 = vpop.f32.mrb[92].mxu0  ;;  %v3437_v58 = vrot.slane %v6722_v24, 4  ;;  %v5278_v41 = vld [vmem:[%s7221_s7 + $0x2a8] sm:$0xff]   ;;  %v5283_v6 = vld [vmem:[%s7221_s7 + $0x2d0] sm:$0xff]  }
 0x3e4   :  { %v2360_v12 = vpop.f32.mrb[93].mxu0  ;;  %2673 = vmatprep.subr.bf16.mxu0 %v5341_v0  ;;  %2956 = vmatprep.subr.bf16.mxu1 %v5341_v0  ;;  %v5282_v26 = vld [vmem:[%s7221_s7 + $0x2c8] sm:$0xff]   ;;  %v5284_v8 = vld [vmem:[%s7221_s7 + $0x2d8] sm:$0xff]  }
 0x3e5   :  { %v2361_v61 = vpop.f32.mrb[94].mxu0  ;;  %v5287_v12 = vld [vmem:[%s7221_s7 + $0x2f0] sm:$0xff]  }
 0x3e6   :  { %v2362_v11 = vpop.f32.mrb[95].mxu0  ;;  %v5288_v61 = vld [vmem:[%s7221_s7 + $0x2f8] sm:$0xff]  }
 0x3e7   :  { %2674 = vmatpush1.bf16.msra.mxu0 %v5235_v42  ;;  %2957 = vmatpush1.bf16.msra.mxu1 %v5236_v40  ;;  %v5285_v42 = vld [vmem:[%s7221_s7 + $0x2e0] sm:$0xff]   ;;  %v5286_v40 = vld [vmem:[%s7221_s7 + $0x2e8] sm:$0xff]  }
 0x3e8   :  { %2675 = vmatprep.subr.bf16.mxu0 %v5341_v0  ;;  %2958 = vmatprep.subr.bf16.mxu1 %v5341_v0  ;;  %v5289_v11 = vld [vmem:[%s7221_s7 + $0x300] sm:$0xff]  }
 0x3eb   :  { %2676 = vmatpush1.bf16.msra.mxu0 %v5237_v31  ;;  %2959 = vmatpush1.bf16.msra.mxu1 %v5238_v3  ;;  %v3436_v31 = vrot.slane %v6720_v21, 4  ;;  %v5290_v3 = vld [vmem:[%s7221_s7 + $0x308] sm:$0xff]  }
 0x3ec   :  { %2960 = vmatprep.subr.bf16.mxu1 %v5341_v0 }
 0x3ee   :  { %2686 = vmatmul.mubr.bf16.vlgmr.msra.gmra.mrb[96].mxu0 %v2575_v30 }
 0x3ef   :  { %2961 = vmatpush1.bf16.msra.mxu1 %v5239_v16  ;;  %v5291_v16 = vld [vmem:[%s7221_s7 + $0x310] sm:$0xff]  }
 0x3f0   :  { %2962 = vmatprep.subr.bf16.mxu1 %v5341_v0 }
 0x3f3   :  { %2963 = vmatpush1.bf16.msra.mxu1 %v5240_v7 }
 0x3f4   :  { %3081 = vmatprep.subr.bf16.mxu1 %v5341_v0 }
 0x3f6   :  { %2973 = vmatmul.mubr.bf16.vlgmr.msra.gmra.mrb[0].mxu1 %v2862_v17  ;;  %v5293_v17 = vld [vmem:[%s7221_s7 + $0x320] sm:$0xff]  }
 0x3f7   :  { %3082 = vmatpush1.bf16.msra.mxu1 %v5241_v51  ;;  %4486 = vmatprep.mubr.msk.bf16.mxu1 %vm2497_vm6, %v6698_v28  ;;  %v5256_v28 = vld [vmem:[%s7221_s7 + $0x1f8] sm:$0xff]  }
 0x3f8   :  { %3083 = vmatprep.subr.bf16.mxu1 %v5341_v0 }
 0x3fb   :  { %3084 = vmatpush1.bf16.msra.mxu1 %v5242_v46 }
 0x3fc   :  { %3085 = vmatprep.subr.bf16.mxu1 %v5341_v0 }
 0x3ff   :  { %3086 = vmatpush1.bf16.msra.mxu1 %v5243_v19  ;;  %v5294_v19 = vld [vmem:[%s7221_s7 + $0x328] sm:$0xff]  }
 0x400   :  { %3087 = vmatprep.subr.bf16.mxu1 %v5341_v0 }
 0x403   :  { %3088 = vmatpush1.bf16.msra.mxu1 %v5244_v9  ;;  %v5295_v9 = vld [vmem:[%s7221_s7 + $0x330] sm:$0xff]  }
 0x404   :  { %3089 = vmatprep.subr.bf16.mxu1 %v5341_v0 }
 0x407   :  { %3090 = vmatpush1.bf16.msra.mxu1 %v5245_v25  ;;  %v5296_v25 = vld [vmem:[%s7221_s7 + $0x338] sm:$0xff]  }
 0x408   :  { %3091 = vmatprep.subr.bf16.mxu1 %v5341_v0 }
 0x40b   :  { %3092 = vmatpush1.bf16.msra.mxu1 %v5246_v27  ;;  %v5297_v27 = vld [vmem:[%s7221_s7 + $0x340] sm:$0xff]  }
 0x40c   :  { %3093 = vmatprep.subr.bf16.mxu1 %v5341_v0 }
 0x40f   :  { %3094 = vmatpush1.bf16.msra.mxu1 %v5247_v43  ;;  %v5298_v43 = vld [vmem:[%s7221_s7 + $0x348] sm:$0xff]  }
 0x410   :  { %3095 = vmatprep.subr.bf16.mxu1 %v5341_v0 }
 0x413   :  { %3096 = vmatpush1.bf16.msra.mxu1 %v5248_v33  ;;  %v5299_v33 = vld [vmem:[%s7221_s7 + $0x350] sm:$0xff]  }
 0x414   :  { %3097 = vmatprep.subr.bf16.mxu1 %v5341_v0 }
 0x417   :  { %3098 = vmatpush1.bf16.msra.mxu1 %v5249_v15  ;;  %v5300_v15 = vld [vmem:[%s7221_s7 + $0x358] sm:$0xff]  }
 0x418   :  { %3099 = vmatprep.subr.bf16.mxu1 %v5341_v0 }
 0x41b   :  { %3100 = vmatpush1.bf16.msra.mxu1 %v5250_v34  ;;  %v5301_v34 = vld [vmem:[%s7221_s7 + $0x360] sm:$0xff]  }
 0x41c   :  { %3101 = vmatprep.subr.bf16.mxu1 %v5341_v0 }
 0x41f   :  { %3102 = vmatpush1.bf16.msra.mxu1 %v5251_v57  ;;  %v3724_v57 = vrot.slane %v6746_v54, 4 }
 0x420   :  { %3103 = vmatprep.subr.bf16.mxu1 %v5341_v0 }
 0x423   :  { %3104 = vmatpush1.bf16.msra.mxu1 %v5252_v52  ;;  %v5302_v52 = vld [vmem:[%s7221_s7 + $0x368] sm:$0xff]  }
 0x424   :  { %3227 = vmatprep.subr.bf16.mxu1 %v5341_v0 }
 0x426   :  { %3114 = vmatmul.mubr.bf16.vlgmr.msra.gmra.mrb[0].mxu1 %v6696_v18  ;;  %v5268_v18 = vld [vmem:[%s7221_s7 + $0x258] sm:$0xff]  }
 0x427   :  { %3228 = vmatpush1.bf16.msra.mxu1 %v5253_v14  ;;  %4523 = vmatprep.mubr.msk.bf16.mxu1 %vm2497_vm6, %v3150_v37  ;;  %v5303_v14 = vld [vmem:[%s7221_s7 + $0x370] sm:$0xff]   ;;  %v5305_v37 = vld [vmem:[%s7221_s7 + $0x380] sm:$0xff]  }
 0x428   :  { %3229 = vmatprep.subr.bf16.mxu1 %v5341_v0 }
 0x42b   :  { %3230 = vmatpush1.bf16.msra.mxu1 %v5254_v32  ;;  %v5306_v32 = vld [vmem:[%s7221_s7 + $0x388] sm:$0xff]  }
 0x42c   :  { %3231 = vmatprep.subr.bf16.mxu1 %v5341_v0 }
 0x42f   :  { %3232 = vmatpush1.bf16.msra.mxu1 %v5255_v45  ;;  %v5307_v45 = vld [vmem:[%s7221_s7 + $0x390] sm:$0xff]  }
 0x430   :  { %3233 = vmatprep.subr.bf16.mxu1 %v5341_v0 }
 0x433   :  { %3234 = vmatpush1.bf16.msra.mxu1 %v5256_v28  ;;  %v5308_v28 = vld [vmem:[%s7221_s7 + $0x398] sm:$0xff]  }
 0x434   :  { %3235 = vmatprep.subr.bf16.mxu1 %v5341_v0 }
 0x437   :  { %3236 = vmatpush1.bf16.msra.mxu1 %v5257_v49  ;;  %v5309_v49 = vld [vmem:[%s7221_s7 + $0x3a0] sm:$0xff]  }
 0x438   :  { %3237 = vmatprep.subr.bf16.mxu1 %v5341_v0 }
 0x43b   :  { %3238 = vmatpush1.bf16.msra.mxu1 %v5258_v50  ;;  %v5310_v50 = vld [vmem:[%s7221_s7 + $0x3a8] sm:$0xff]  }
 0x43c   :  { %3239 = vmatprep.subr.bf16.mxu1 %v5341_v0 }
 0x43f   :  { %3240 = vmatpush1.bf16.msra.mxu1 %v5259_v36  ;;  %v5311_v36 = vld [vmem:[%s7221_s7 + $0x3b0] sm:$0xff]  }
 0x440   :  { %3241 = vmatprep.subr.bf16.mxu1 %v5341_v0 }
 0x443   :  { %3242 = vmatpush1.bf16.msra.mxu1 %v5260_v10  ;;  %v5312_v10 = vld [vmem:[%s7221_s7 + $0x3b8] sm:$0xff]  }
 0x444   :  { %3243 = vmatprep.subr.bf16.mxu1 %v5341_v0 }
 0x447   :  { %3244 = vmatpush1.bf16.msra.mxu1 %v5261_v13  ;;  %v5313_v13 = vld [vmem:[%s7221_s7 + $0x3c0] sm:$0xff]  }
 0x448   :  { %3245 = vmatprep.subr.bf16.mxu1 %v5341_v0 }
 0x44b   :  { %3246 = vmatpush1.bf16.msra.mxu1 %v5262_v20  ;;  %v3723_v20 = vrot.slane %v6744_v53, 4 }
 0x44c   :  { %3247 = vmatprep.subr.bf16.mxu1 %v5341_v0 }
 0x44f   :  { %3248 = vmatpush1.bf16.msra.mxu1 %v5263_v35  ;;  %v5314_v35 = vld [vmem:[%s7221_s7 + $0x3c8] sm:$0xff]  }
 0x450   :  { %3249 = vmatprep.subr.bf16.mxu1 %v5341_v0 }
 0x453   :  { %3250 = vmatpush1.bf16.msra.mxu1 %v5264_v38  ;;  %v5315_v38 = vld [vmem:[%s7221_s7 + $0x3d0] sm:$0xff]  }
 0x454   :  { %3368 = vmatprep.subr.bf16.mxu1 %v5341_v0 }
 0x456   :  { %3260 = vmatmul.mubr.bf16.vlgmr.msra.gmra.mrb[0].mxu1 %v3149_v44  ;;  %v5318_v44 = vld [vmem:[%s7221_s7 + $0x3e8] sm:$0xff]  }
 0x457   :  { %3369 = vmatpush1.bf16.msra.mxu1 %v5265_v47  ;;  %4560 = vmatprep.mubr.msk.bf16.mxu1 %vm2497_vm6, %v6722_v24  ;;  %v5280_v24 = vld [vmem:[%s7221_s7 + $0x2b8] sm:$0xff]   ;;  %v5317_v47 = vld [vmem:[%s7221_s7 + $0x3e0] sm:$0xff]  }
 0x458   :  { %3370 = vmatprep.subr.bf16.mxu1 %v5341_v0 }
 0x45b   :  { %3371 = vmatpush1.bf16.msra.mxu1 %v5266_v2  ;;  %v5319_v2 = vld [vmem:[%s7221_s7 + $0x3f0] sm:$0xff]  }
 0x45c   :  { %3372 = vmatprep.subr.bf16.mxu1 %v5341_v0 }
 0x45f   :  { %3373 = vmatpush1.bf16.msra.mxu1 %v5267_v48  ;;  %v5320_v48 = vld [vmem:[%s7221_s7 + $0x3f8] sm:$0xff]  }
 0x460   :  { %3374 = vmatprep.subr.bf16.mxu1 %v5341_v0 }
 0x463   :  { %3375 = vmatpush1.bf16.msra.mxu1 %v5268_v18  ;;  %v5321_v18 = vld [vmem:[%s7221_s7 + $0x400] sm:$0xff]  }
 0x464   :  { %3376 = vmatprep.subr.bf16.mxu1 %v5341_v0 }
 0x467   :  { %3377 = vmatpush1.bf16.msra.mxu1 %v5269_v55  ;;  %v5322_v55 = vld [vmem:[%s7221_s7 + $0x408] sm:$0xff]  }
 0x468   :  { %3378 = vmatprep.subr.bf16.mxu1 %v5341_v0 }
 0x46b   :  { %3379 = vmatpush1.bf16.msra.mxu1 %v5270_v59  ;;  %v5323_v59 = vld [vmem:[%s7221_s7 + $0x410] sm:$0xff]  }
 0x46c   :  { %3380 = vmatprep.subr.bf16.mxu1 %v5341_v0 }
 0x46f   :  { %3381 = vmatpush1.bf16.msra.mxu1 %v5271_v62  ;;  %v5324_v62 = vld [vmem:[%s7221_s7 + $0x418] sm:$0xff]  }
 0x470   :  { %3382 = vmatprep.subr.bf16.mxu1 %v5341_v0 }
 0x473   :  { %3383 = vmatpush1.bf16.msra.mxu1 %v5272_v22  ;;  %v5325_v22 = vld [vmem:[%s7221_s7 + $0x420] sm:$0xff]  }
 0x474   :  { %3384 = vmatprep.subr.bf16.mxu1 %v5341_v0 }
 0x477   :  { %3385 = vmatpush1.bf16.msra.mxu1 %v5273_v63  ;;  %v4011_v63 = vrot.slane %v6770_v29, 4 }
 0x478   :  { %3386 = vmatprep.subr.bf16.mxu1 %v5341_v0 }
 0x47b   :  { %3387 = vmatpush1.bf16.msra.mxu1 %v5274_v56  ;;  %v5326_v56 = vld [vmem:[%s7221_s7 + $0x428] sm:$0xff]  }
 0x47c   :  { %3388 = vmatprep.subr.bf16.mxu1 %v5341_v0 }
 0x47f   :  { %3389 = vmatpush1.bf16.msra.mxu1 %v5275_v60  ;;  %v5327_v60 = vld [vmem:[%s7221_s7 + $0x430] sm:$0xff]  }
 0x480   :  { %3390 = vmatprep.subr.bf16.mxu1 %v5341_v0 }
 0x483   :  { %3391 = vmatpush1.bf16.msra.mxu1 %v5276_v39  ;;  %v5329_v39 = vld [vmem:[%s7221_s7 + $0x440] sm:$0xff]  }
 0x484   :  { %3514 = vmatprep.subr.bf16.mxu1 %v5341_v0 }
 0x486   :  { %3401 = vmatmul.mubr.bf16.vlgmr.msra.gmra.mrb[0].mxu1 %v6720_v21  ;;  %v5292_v21 = vld [vmem:[%s7221_s7 + $0x318] sm:$0xff]  }
 0x487   :  { %3515 = vmatpush1.bf16.msra.mxu1 %v5277_v1  ;;  %4597 = vmatprep.mubr.msk.bf16.mxu1 %vm2497_vm6, %v3437_v58  ;;  %v5330_v1 = vld [vmem:[%s7221_s7 + $0x448] sm:$0xff]   ;;  %v5331_v58 = vld [vmem:[%s7221_s7 + $0x450] sm:$0xff]  }
 0x488   :  { %3516 = vmatprep.subr.bf16.mxu1 %v5341_v0 }
 0x48b   :  { %3517 = vmatpush1.bf16.msra.mxu1 %v5278_v41  ;;  %v5332_v41 = vld [vmem:[%s7221_s7 + $0x458] sm:$0xff]  }
 0x48c   :  { %3518 = vmatprep.subr.bf16.mxu1 %v5341_v0 }
 0x48f   :  { %3519 = vmatpush1.bf16.msra.mxu1 %v5279_v5  ;;  %v5333_v5 = vld [vmem:[%s7221_s7 + $0x460] sm:$0xff]  }
 0x490   :  { %3520 = vmatprep.subr.bf16.mxu1 %v5341_v0 }
 0x493   :  { %3521 = vmatpush1.bf16.msra.mxu1 %v5280_v24  ;;  %v5334_v24 = vld [vmem:[%s7221_s7 + $0x468] sm:$0xff]  }
 0x494   :  { %3522 = vmatprep.subr.bf16.mxu1 %v5341_v0 }
 0x497   :  { %3523 = vmatpush1.bf16.msra.mxu1 %v5281_v23  ;;  %v5335_v23 = vld [vmem:[%s7221_s7 + $0x470] sm:$0xff]  }
 0x498   :  { %3524 = vmatprep.subr.bf16.mxu1 %v5341_v0 }
 0x49b   :  { %3525 = vmatpush1.bf16.msra.mxu1 %v5282_v26  ;;  %v5336_v26 = vld [vmem:[%s7221_s7 + $0x478] sm:$0xff]  }
 0x49c   :  { %3526 = vmatprep.subr.bf16.mxu1 %v5341_v0 }
 0x49f   :  { %3527 = vmatpush1.bf16.msra.mxu1 %v5283_v6  ;;  %v4010_v6 = vrot.slane %v6768_v4, 4 }
 0x4a0   :  { %3528 = vmatprep.subr.bf16.mxu1 %v5341_v0 }
 0x4a3   :  { %3529 = vmatpush1.bf16.msra.mxu1 %v5284_v8  ;;  %v4338_v8 = vld [vmem:[%s7223_s8] ss:$0 sm:$0xff] }
 0x4a4   :  { %3530 = vmatprep.subr.bf16.mxu1 %v5341_v0 }
 0x4a7   :  { %3531 = vmatpush1.bf16.msra.mxu1 %v5285_v42 }
 0x4a8   :  { %3532 = vmatprep.subr.bf16.mxu1 %v5341_v0 }
 0x4ab   :  { %3533 = vmatpush1.bf16.msra.mxu1 %v5286_v40 }
 0x4ac   :  { %3534 = vmatprep.subr.bf16.mxu1 %v5341_v0 }
 0x4af   :  { %3535 = vmatpush1.bf16.msra.mxu1 %v5287_v12 }
 0x4b0   :  { %3536 = vmatprep.subr.bf16.mxu1 %v5341_v0 }
 0x4b3   :  { %3537 = vmatpush1.bf16.msra.mxu1 %v5288_v61 }
 0x4b4   :  { %3655 = vmatprep.subr.bf16.mxu1 %v5341_v0 }
 0x4b6   :  { %3547 = vmatmul.mubr.bf16.vlgmr.msra.gmra.mrb[0].mxu1 %v3436_v31 }
 0x4b7   :  { %3656 = vmatpush1.bf16.msra.mxu1 %v5289_v11  ;;  %4634 = vmatprep.mubr.msk.bf16.mxu1 %vm2497_vm6, %v6746_v54  ;;  %v5304_v54 = vld [vmem:[%s7221_s7 + $0x378] sm:$0xff]  }
 0x4b8   :  { %3657 = vmatprep.subr.bf16.mxu1 %v5341_v0 }
 0x4bb   :  { %3658 = vmatpush1.bf16.msra.mxu1 %v5290_v3 }
 0x4bc   :  { %3659 = vmatprep.subr.bf16.mxu1 %v5341_v0 }
 0x4bf   :  { %3660 = vmatpush1.bf16.msra.mxu1 %v5291_v16 }
 0x4c0   :  { %3661 = vmatprep.subr.bf16.mxu1 %v5341_v0 }
 0x4c1   :  { %v7020_v30 = vpop.f32.mrb[96].mxu0 }
 0x4c2   :  { %v2689_v7 = vpop.f32.mrb[97].mxu0  ;;  %v4770_v42 = vadd.f32 %v4338_v8, %v7020_v30 }
 0x4c3   :  { %v2690_v51 = vpop.f32.mrb[98].mxu0  ;;  %3662 = vmatpush1.bf16.msra.mxu1 %v5292_v21 }
 0x4c4   :  { %v2691_v46 = vpop.f32.mrb[99].mxu0  ;;  %3663 = vmatprep.subr.bf16.mxu1 %v5341_v0 }
 0x4c7   :  { %3664 = vmatpush1.bf16.msra.mxu1 %v5293_v17 }
 0x4c8   :  { %3665 = vmatprep.subr.bf16.mxu1 %v5341_v0 }
 0x4cb   :  { %3666 = vmatpush1.bf16.msra.mxu1 %v5294_v19 }
 0x4cc   :  { %3667 = vmatprep.subr.bf16.mxu1 %v5341_v0 }
 0x4cf   :  { %3668 = vmatpush1.bf16.msra.mxu1 %v5295_v9 }
 0x4d0   :  { %3669 = vmatprep.subr.bf16.mxu1 %v5341_v0 }
 0x4d3   :  { %3670 = vmatpush1.bf16.msra.mxu1 %v5296_v25 }
 0x4d4   :  { %3671 = vmatprep.subr.bf16.mxu1 %v5341_v0 }
 0x4d7   :  { %3672 = vmatpush1.bf16.msra.mxu1 %v5297_v27 }
 0x4d8   :  { %3673 = vmatprep.subr.bf16.mxu1 %v5341_v0 }
 0x4db   :  { %3674 = vmatpush1.bf16.msra.mxu1 %v5298_v43 }
 0x4dc   :  { %3675 = vmatprep.subr.bf16.mxu1 %v5341_v0 }
 0x4df   :  { %3676 = vmatpush1.bf16.msra.mxu1 %v5299_v33 }
 0x4e0   :  { %3677 = vmatprep.subr.bf16.mxu1 %v5341_v0 }
 0x4e3   :  { %3678 = vmatpush1.bf16.msra.mxu1 %v5300_v15 }
 0x4e4   :  { %3801 = vmatprep.subr.bf16.mxu1 %v5341_v0 }
 0x4e6   :  { %3688 = vmatmul.mubr.bf16.vlgmr.msra.gmra.mrb[0].mxu1 %v6744_v53  ;;  %v5316_v53 = vld [vmem:[%s7221_s7 + $0x3d8] sm:$0xff]  }
 0x4e7   :  { %3802 = vmatpush1.bf16.msra.mxu1 %v5301_v34  ;;  %4671 = vmatprep.mubr.msk.bf16.mxu1 %vm2497_vm6, %v3724_v57 }
 0x4e8   :  { %3803 = vmatprep.subr.bf16.mxu1 %v5341_v0 }
 0x4eb   :  { %3804 = vmatpush1.bf16.msra.mxu1 %v5302_v52 }
 0x4ec   :  { %3805 = vmatprep.subr.bf16.mxu1 %v5341_v0 }
 0x4ef   :  { %3806 = vmatpush1.bf16.msra.mxu1 %v5303_v14 }
 0x4f0   :  { %3807 = vmatprep.subr.bf16.mxu1 %v5341_v0 }
 0x4f3   :  { %3808 = vmatpush1.bf16.msra.mxu1 %v5304_v54 }
 0x4f4   :  { %3809 = vmatprep.subr.bf16.mxu1 %v5341_v0 }
 0x4f7   :  { %3810 = vmatpush1.bf16.msra.mxu1 %v5305_v37 }
 0x4f8   :  { %3811 = vmatprep.subr.bf16.mxu1 %v5341_v0 }
 0x4fb   :  { %3812 = vmatpush1.bf16.msra.mxu1 %v5306_v32 }
 0x4fc   :  { %3813 = vmatprep.subr.bf16.mxu1 %v5341_v0 }
 0x4ff   :  { %3814 = vmatpush1.bf16.msra.mxu1 %v5307_v45 }
 0x500   :  { %3815 = vmatprep.subr.bf16.mxu1 %v5341_v0 }
 0x503   :  { %3816 = vmatpush1.bf16.msra.mxu1 %v5308_v28 }
 0x504   :  { %3817 = vmatprep.subr.bf16.mxu1 %v5341_v0 }
 0x507   :  { %3818 = vmatpush1.bf16.msra.mxu1 %v5309_v49 }
 0x508   :  { %3819 = vmatprep.subr.bf16.mxu1 %v5341_v0 }
 0x50b   :  { %3820 = vmatpush1.bf16.msra.mxu1 %v5310_v50 }
 0x50c   :  { %3821 = vmatprep.subr.bf16.mxu1 %v5341_v0 }
 0x50f   :  { %3822 = vmatpush1.bf16.msra.mxu1 %v5311_v36 }
 0x510   :  { %3823 = vmatprep.subr.bf16.mxu1 %v5341_v0 }
 0x513   :  { %3824 = vmatpush1.bf16.msra.mxu1 %v5312_v10 }
 0x514   :  { %3942 = vmatprep.subr.bf16.mxu1 %v5341_v0 }
 0x516   :  { %3834 = vmatmul.mubr.bf16.vlgmr.msra.gmra.mrb[0].mxu1 %v3723_v20 }
 0x517   :  { %3943 = vmatpush1.bf16.msra.mxu1 %v5313_v13  ;;  %4708 = vmatprep.mubr.msk.bf16.mxu1 %vm2497_vm6, %v6770_v29  ;;  %v5328_v29 = vld [vmem:[%s7221_s7 + $0x438] sm:$0xff]  }
 0x518   :  { %3944 = vmatprep.subr.bf16.mxu1 %v5341_v0 }
 0x51b   :  { %3945 = vmatpush1.bf16.msra.mxu1 %v5314_v35 }
 0x51c   :  { %3946 = vmatprep.subr.bf16.mxu1 %v5341_v0 }
 0x51f   :  { %3947 = vmatpush1.bf16.msra.mxu1 %v5315_v38 }
 0x520   :  { %3948 = vmatprep.subr.bf16.mxu1 %v5341_v0 }
 0x523   :  { %3949 = vmatpush1.bf16.msra.mxu1 %v5316_v53 }
 0x524   :  { %3950 = vmatprep.subr.bf16.mxu1 %v5341_v0 }
 0x527   :  { %3951 = vmatpush1.bf16.msra.mxu1 %v5317_v47 }
 0x528   :  { %3952 = vmatprep.subr.bf16.mxu1 %v5341_v0 }
 0x52b   :  { %3953 = vmatpush1.bf16.msra.mxu1 %v5318_v44 }
 0x52c   :  { %3954 = vmatprep.subr.bf16.mxu1 %v5341_v0 }
 0x52f   :  { %3955 = vmatpush1.bf16.msra.mxu1 %v5319_v2 }
 0x530   :  { %3956 = vmatprep.subr.bf16.mxu1 %v5341_v0 }
 0x533   :  { %3957 = vmatpush1.bf16.msra.mxu1 %v5320_v48 }
 0x534   :  { %3958 = vmatprep.subr.bf16.mxu1 %v5341_v0 }
 0x537   :  { %3959 = vmatpush1.bf16.msra.mxu1 %v5321_v18 }
 0x538   :  { %3960 = vmatprep.subr.bf16.mxu1 %v5341_v0 }
 0x53b   :  { %3961 = vmatpush1.bf16.msra.mxu1 %v5322_v55 }
 0x53c   :  { %3962 = vmatprep.subr.bf16.mxu1 %v5341_v0 }
 0x53f   :  { %3963 = vmatpush1.bf16.msra.mxu1 %v5323_v59 }
 0x540   :  { %3964 = vmatprep.subr.bf16.mxu1 %v5341_v0 }
 0x543   :  { %3965 = vmatpush1.bf16.msra.mxu1 %v5324_v62 }
 0x544   :  { %4088 = vmatprep.subr.bf16.mxu1 %v5341_v0 }
 0x546   :  { %3975 = vmatmul.mubr.bf16.vlgmr.msra.gmra.mrb[0].mxu1 %v6768_v4 }
 0x547   :  { %4089 = vmatpush1.bf16.msra.mxu1 %v5325_v22  ;;  %4745 = vmatprep.mubr.msk.bf16.mxu1 %vm2497_vm6, %v4011_v63 }
 0x548   :  { %4090 = vmatprep.subr.bf16.mxu1 %v5341_v0 }
 0x54b   :  { %4091 = vmatpush1.bf16.msra.mxu1 %v5326_v56 }
 0x54c   :  { %4092 = vmatprep.subr.bf16.mxu1 %v5341_v0 }
 0x54f   :  { %4093 = vmatpush1.bf16.msra.mxu1 %v5327_v60 }
 0x550   :  { %4094 = vmatprep.subr.bf16.mxu1 %v5341_v0 }
 0x553   :  { %4095 = vmatpush1.bf16.msra.mxu1 %v5328_v29 }
 0x554   :  { %4096 = vmatprep.subr.bf16.mxu1 %v5341_v0 }
 0x557   :  { %4097 = vmatpush1.bf16.msra.mxu1 %v5329_v39 }
 0x558   :  { %4098 = vmatprep.subr.bf16.mxu1 %v5341_v0 }
 0x55b   :  { %4099 = vmatpush1.bf16.msra.mxu1 %v5330_v1 }
 0x55c   :  { %4100 = vmatprep.subr.bf16.mxu1 %v5341_v0 }
 0x55f   :  { %4101 = vmatpush1.bf16.msra.mxu1 %v5331_v58 }
 0x560   :  { %4102 = vmatprep.subr.bf16.mxu1 %v5341_v0 }
 0x563   :  { %4103 = vmatpush1.bf16.msra.mxu1 %v5332_v41 }
 0x564   :  { %4104 = vmatprep.subr.bf16.mxu1 %v5341_v0 }
 0x567   :  { %4105 = vmatpush1.bf16.msra.mxu1 %v5333_v5 }
 0x568   :  { %4106 = vmatprep.subr.bf16.mxu1 %v5341_v0 }
 0x56b   :  { %4107 = vmatpush1.bf16.msra.mxu1 %v5334_v24 }
 0x56c   :  { %4108 = vmatprep.subr.bf16.mxu1 %v5341_v0 }
 0x56f   :  { %4109 = vmatpush1.bf16.msra.mxu1 %v5335_v23 }
 0x570   :  { %4110 = vmatprep.subr.bf16.mxu1 %v5341_v0 }
 0x573   :  { %4111 = vmatpush1.bf16.msra.mxu1 %v5336_v26 }
 0x576   :  { %4121 = vmatmul.mubr.bf16.vlgmr.msra.gmra.mrb[0].mxu1 %v4010_v6 }
 0x649   :  { %v4122_v40 = vpop.f32.mrb[0].mxu1 }
 0x64a   :  { %v4771_v12 = vadd.f32 %v4770_v42, %v4122_v40  ;;  %v4124_v61 = vpop.f32.mrb[1].mxu1 }
 0x64b   :  { %v4125_v11 = vpop.f32.mrb[2].mxu1 }
 0x64c   :  { %v4126_v31 = vpop.f32.mrb[3].mxu1  ;;  %4129 = vmax.xlane.f32.xlu0 %v4771_v12 }
 0x6d9   :  { %v4130_v3 = vpop.xlane.xlu0 %4129 }
 0x6da   :  { %v4131_v16 = vsub.f32 %v4771_v12, %v4130_v3 }
 0x6dc   :  { %v4132_v21 = vmul.f32 1.442695, %v4131_v16 }
 0x6de   :  { %5337 = vpow2.f32 %v4132_v21 }
 0x6e8   :  { %v5338_v0 = vpop.eup %5337 }
 0x6e9   :  { %4134 = vadd.xlane.f32.xlu1 %v5338_v0 }
 0x776   :  { %v4135_v4 = vpop.xlane.xlu1 %4134 }
 0x777   :  { %5339 = vlog2.f32 %v4135_v4 }
 0x781   :  { %v5340_v7 = vpop.eup %5339 }
 0x782   :  { %v4137_v51 = vmul.f32 0.6931472, %v5340_v7 }
 0x784   :  { %v4138_v17 = vsub.f32 %v4131_v16, %v4137_v51 }
 0x786   :  { %4139 = vst [vmem:[%s7224_s9] sm:$0xff] %v4138_v17 }

</bundles_post_ra>
